<compile_context>
chip_gen: v5e
topology: v5e:2x2
jax: 0.10.0
libtpu: 0.0.40
codegen_flags: <defaults>
</compile_context>

<pallas_src>
import jax
import jax.numpy as jnp
from jax import lax
from jax.experimental import pallas as pl
from jax.experimental.pallas import tpu as pltpu

EPS = 1e-5
LANE = 128
CONV_DTYPE = jnp.bfloat16    # MXU operand dtype; flip to jnp.float32 for a
                             # bit-tight (2e-4) match with the f32 reference.


# ----------------------------------------------------------------------------
# Kernel: one 3x3 "same" conv (+bias) on a row-tile, plus BN partial stats.
# ----------------------------------------------------------------------------
def _conv3x3_kernel(xt_ref, w_ref, b_ref, out_ref, st_ref):
    """
    xt_ref : (1, TH+2, W+2, Cp)  input tile incl. 1-px zero halo  (CONV_DTYPE)
    w_ref  : (9, Cp, Cp)         weights, [tap, cin, cout]        (CONV_DTYPE)
    b_ref  : (1, Cp)             conv bias                        (f32)
    out_ref: (1, TH, W, Cp)      pre-BN conv output               (f32)
    st_ref : (1, 2, Cp)          per-tile (sum, sum_sq) of out    (f32)
    """
    _, TH, W, Cp = out_ref.shape
    acc = jnp.zeros((TH * W, Cp), jnp.float32)
    for dy in range(3):
        for dx in range(3):
            # bf16 patch (MXU LHS); accumulation stays in f32.
            patch = xt_ref[0:1, dy:dy + TH, dx:dx + W, :].reshape(TH * W, Cp)
            acc = acc + jnp.dot(patch, w_ref[dy * 3 + dx],
                                preferred_element_type=jnp.float32)
    h = acc + b_ref[...]                                    # (TH*W, Cp)
    out_ref[...] = h.reshape(1, TH, W, Cp)
    # Per-tile partial statistics for the two-pass BatchNorm (combined in XLA).
    st_ref[:, 0:1, :] = jnp.sum(h, axis=0, keepdims=True).reshape(1, 1, Cp)
    st_ref[:, 1:2, :] = jnp.sum(h * h, axis=0, keepdims=True).reshape(1, 1, Cp)


def _conv_pass(xt, w, b):
    """pallas_call wrapper: 3x3 conv + bias + per-tile BN partial stats."""
    G, THp2, Wp2, Cp = xt.shape
    TH, W = THp2 - 2, Wp2 - 2
    m_total = G * TH * W
    ibytes = xt.dtype.itemsize
    cost = pl.CostEstimate(
        flops=2 * m_total * 9 * Cp * Cp,
        transcendentals=0,
        bytes_accessed=(xt.size * ibytes + w.size * w.dtype.itemsize
                        + b.size * 4 + m_total * Cp * 4 + G * 2 * Cp * 4))
    return pl.pallas_call(
        _conv3x3_kernel,
        grid=(G,),
        in_specs=[
            pl.BlockSpec((1, THp2, Wp2, Cp), lambda g: (g, 0, 0, 0)),
            pl.BlockSpec((9, Cp, Cp), lambda g: (0, 0, 0)),      # resident
            pl.BlockSpec((1, Cp), lambda g: (0, 0)),             # resident
        ],
        out_specs=(
            pl.BlockSpec((1, TH, W, Cp), lambda g: (g, 0, 0, 0)),
            pl.BlockSpec((1, 2, Cp), lambda g: (g, 0, 0)),
        ),
        out_shape=(
            jax.ShapeDtypeStruct((G, TH, W, Cp), jnp.float32),
            jax.ShapeDtypeStruct((G, 2, Cp), jnp.float32),
        ),
        compiler_params=pltpu.CompilerParams(
            dimension_semantics=("parallel",)),
        cost_estimate=cost,
    )(xt, w, b)


# ----------------------------------------------------------------------------
# Host-side (tiny) helpers
# ----------------------------------------------------------------------------
def _fold_bn(stats, gamma, beta, count):
    """Combine per-tile partials into BN affine form: y = x*scale + bias."""
    s = jnp.sum(stats[:, 0, :], axis=0)
    ss = jnp.sum(stats[:, 1, :], axis=0)
    mean = s / count
    var = jnp.maximum(ss / count - mean * mean, 0.0)        # biased variance
    scale = gamma * lax.rsqrt(var + EPS)
    bias = beta - mean * scale
    return scale, bias


def _pick_tile_rows(H):
    """Largest row-tile from (32,16,8) that divides H with >=2 tiles, else H."""
    for th in (32, 16, 8):
        if H % th == 0 and H // th >= 2:
            return th
    return H


# ----------------------------------------------------------------------------
# Forward wrapper
# ----------------------------------------------------------------------------
@jax.jit
def residual_block_forward(x_nchw, params):
    N, C, H, W = x_nchw.shape
    Cp = ((C + LANE - 1) // LANE) * LANE      # lane-dense channel padding
    TH = _pick_tile_rows(H)
    NT = H // TH
    M = N * H * W                             # BN population size

    # NCHW -> NHWC (channels on the 128-lane axis); padded channels are kept
    # exactly zero end-to-end (zero weight/bias/gamma/beta padding).
    x = jnp.transpose(x_nchw, (0, 2, 3, 1)).astype(jnp.float32)
    x = jnp.pad(x, ((0, 0), (0, 0), (0, 0), (0, Cp - C)))          # (N,H,W,Cp)

    def prep_w(w_oihw):        # (Cout,Cin,3,3) -> (9, Cp_in, Cp_out), bf16
        wk = jnp.transpose(w_oihw, (2, 3, 1, 0))                   # (3,3,Ci,Co)
        wk = jnp.pad(wk, ((0, 0), (0, 0), (0, Cp - C), (0, Cp - C)))
        return wk.reshape(9, Cp, Cp).astype(CONV_DTYPE)

    def prep_b(v):             # conv bias -> (1, Cp) f32 (kernel input)
        return jnp.pad(v, (0, Cp - C)).reshape(1, Cp).astype(jnp.float32)

    def prep_c(v):             # gamma/beta -> (Cp,) f32 (host-side only)
        return jnp.pad(v, (0, Cp - C)).astype(jnp.float32)

    w1, b1 = prep_w(params["w1"]), prep_b(params["b1"])
    w2, b2 = prep_w(params["w2"]), prep_b(params["b2"])
    g1, be1 = prep_c(params["g1"]), prep_c(params["be1"])
    g2, be2 = prep_c(params["g2"]), prep_c(params["be2"])

    def to_tiles(a):           # (N,H,W,Cp) -> (N*NT, TH+2, W+2, Cp) bf16
        ap = jnp.pad(a, ((0, 0), (1, 1), (1, 1), (0, 0)))
        t = jnp.stack([ap[:, i * TH:i * TH + TH + 2] for i in range(NT)],
                      axis=1)
        return t.reshape(N * NT, TH + 2, W + 2, Cp).astype(CONV_DTYPE)

    # ---- conv1 (+bias) + per-tile BN1 partial statistics --------------------
    h1, st1 = _conv_pass(to_tiles(x), w1, b1)
    scale1, bias1 = _fold_bn(st1, g1, be1, M)

    # BN1 affine + ReLU (+ re-pad / re-tile / bf16 cast): fused by XLA.
    a1 = jnp.maximum(h1.reshape(N, H, W, Cp) * scale1 + bias1, 0.0)

    # ---- conv2 (+bias) + per-tile BN2 partial statistics ---------------------
    h2, st2 = _conv_pass(to_tiles(a1), w2, b2)
    scale2, bias2 = _fold_bn(st2, g2, be2, M)

    # BN2 affine + residual add + ReLU + channel strip + NCHW transpose: XLA.
    y = jnp.maximum(x + h2.reshape(N, H, W, Cp) * scale2 + bias2, 0.0)
    return jnp.transpose(y[..., :C], (0, 3, 1, 2))


# ----------------------------------------------------------------------------
# Pure-JAX reference (training-mode BN, matches the PyTorch module)
# ----------------------------------------------------------------------------
def residual_block_reference(x, params, conv_dtype=jnp.float32):
    """conv_dtype=bfloat16 emulates the kernel's MXU operand rounding
    (bf16 multiplies, f32 accumulation); float32 is the exact reference."""
    def conv(a, w, b):
        y = lax.conv_general_dilated(
            a.astype(conv_dtype), w.astype(conv_dtype), (1, 1), ((1, 1), (1, 1)),
            dimension_numbers=("NCHW", "OIHW", "NCHW"),
            preferred_element_type=jnp.float32,
            precision=lax.Precision.HIGHEST)
        return y + b[None, :, None, None]

    def bn(a, g, be):
        mean = jnp.mean(a, axis=(0, 2, 3), keepdims=True)
        var = jnp.mean((a - mean) ** 2, axis=(0, 2, 3), keepdims=True)
        return ((a - mean) * lax.rsqrt(var + EPS) * g[None, :, None, None]
                + be[None, :, None, None])

    h = jax.nn.relu(bn(conv(x, params["w1"], params["b1"]),
                       params["g1"], params["be1"]))
    y = bn(conv(h, params["w2"], params["b2"]), params["g2"], params["be2"])
    return jax.nn.relu(x + y)


def init_params(key, C):
    k1, k2, k3, k4 = jax.random.split(key, 4)
    return {
        "w1": 0.1 * jax.random.normal(k1, (C, C, 3, 3), jnp.float32),
        "b1": 0.05 * jax.random.normal(k2, (C,), jnp.float32),
        "g1": jnp.ones((C,), jnp.float32),     # BatchNorm2d default affine init
        "be1": jnp.zeros((C,), jnp.float32),
        "w2": 0.1 * jax.random.normal(k3, (C, C, 3, 3), jnp.float32),
        "b2": 0.05 * jax.random.normal(k4, (C,), jnp.float32),
        "g2": jnp.ones((C,), jnp.float32),
        "be2": jnp.zeros((C,), jnp.float32),
    }


if __name__ == "__main__":
    key = jax.random.PRNGKey(0)
    kx, kp = jax.random.split(key)
    N, C, H, W = 2, 4, 16, 16
    x = jax.random.normal(kx, (N, C, H, W), jnp.float32)    # NCHW, like PyTorch
    params = init_params(kp, C)

    out = jax.block_until_ready(residual_block_forward(x, params))
    assert out.shape == (N, C, H, W), out.shape

    # Check 1: against a reference that rounds the conv operands the same way
    # the kernel does (bf16 multiplies, f32 accumulation) -> validates the
    # Pallas mechanics (tiling, halo, conv, two-pass BN, residual).
    ref_emul = jax.block_until_ready(
        residual_block_reference(x, params, CONV_DTYPE))
    tight = 3e-2 if CONV_DTYPE == jnp.bfloat16 else 2e-4
    emul_err = float(jnp.max(jnp.abs(out - ref_emul)))
    assert jnp.allclose(out, ref_emul, atol=tight, rtol=tight), emul_err

    # Check 2: against the pure-f32 reference -> bounds the bf16 numerics
    # drift of feeding the MXU bf16 operands through conv->BN->conv->BN.
    ref32 = jax.block_until_ready(
        residual_block_reference(x, params, jnp.float32))
    max_err = float(jnp.max(jnp.abs(out - ref32)))
    mean_err = float(jnp.mean(jnp.abs(out - ref32)))
    assert max_err < 1e-1 and mean_err < 1e-2, (max_err, mean_err)

    print("KERNEL_OK")
</pallas_src>

<mosaic_0001>
module attributes {stable_mosaic.version = 11 : i64} {
  func.func @_conv3x3_kernel(%arg0: i32, %arg1: memref<1x10x18x128xbf16, #tpu.memory_space<vmem>>, %arg2: memref<9x128x128xbf16, #tpu.memory_space<vmem>>, %arg3: memref<1x128xf32, #tpu.memory_space<vmem>>, %arg4: memref<1x8x16x128xf32, #tpu.memory_space<vmem>>, %arg5: memref<1x2x128xf32, #tpu.memory_space<vmem>>) attributes {dimension_semantics = [#tpu.dimension_semantics<parallel>], iteration_bounds = array<i64: 4>, scalar_prefetch = 0 : i64, scratch_operands = 0 : i64, tpu.core_type = #tpu.core_type<tc>, window_params = [{transform_indices = @transform_0, window_bounds = array<i64: 1, 10, 18, 128>}, {pipeline_mode = #tpu.pipeline_mode<synchronous>, transform_indices = @transform_1, window_bounds = array<i64: 9, 128, 128>}, {pipeline_mode = #tpu.pipeline_mode<synchronous>, transform_indices = @transform_2, window_bounds = array<i64: 1, 128>}, {transform_indices = @transform_3, window_bounds = array<i64: 1, 8, 16, 128>}, {transform_indices = @transform_4, window_bounds = array<i64: 1, 2, 128>}]} {
    %cst = arith.constant 0.000000e+00 : f32
    %0 = vector.broadcast %cst : f32 to vector<128x128xf32>
    %c0 = arith.constant 0 : index
    %c0_0 = arith.constant 0 : index
    %c0_1 = arith.constant 0 : index
    %c0_2 = arith.constant 0 : index
    %1 = vector.load %arg1[%c0, %c0_0, %c0_1, %c0_2] : memref<1x10x18x128xbf16, #tpu.memory_space<vmem>>, vector<1x8x16x128xbf16>
    %2 = vector.shape_cast %1 : vector<1x8x16x128xbf16> to vector<128x128xbf16>
    %c0_3 = arith.constant 0 : index
    %c0_4 = arith.constant 0 : index
    %c0_5 = arith.constant 0 : index
    %3 = vector.load %arg2[%c0_3, %c0_4, %c0_5] : memref<9x128x128xbf16, #tpu.memory_space<vmem>>, vector<1x128x128xbf16>
    %4 = vector.shape_cast %3 : vector<1x128x128xbf16> to vector<128x128xbf16>
    %cst_6 = arith.constant dense<0.000000e+00> : vector<128x128xf32>
    %5 = tpu.matmul %2, %4, %cst_6 {dimension_numbers = #tpu.dot_dimension_numbers<[1], [0], [0], [1], [0, 0, 1, 1], [], []>} : vector<128x128xbf16>, vector<128x128xbf16>, vector<128x128xf32> -> vector<128x128xf32>
    %6 = arith.addf %0, %5 : vector<128x128xf32>
    %c0_7 = arith.constant 0 : index
    %c0_8 = arith.constant 0 : index
    %c1 = arith.constant 1 : index
    %c0_9 = arith.constant 0 : index
    %7 = vector.load %arg1[%c0_7, %c0_8, %c1, %c0_9] : memref<1x10x18x128xbf16, #tpu.memory_space<vmem>>, vector<1x8x16x128xbf16>
    %8 = vector.shape_cast %7 : vector<1x8x16x128xbf16> to vector<128x128xbf16>
    %c1_10 = arith.constant 1 : index
    %c0_11 = arith.constant 0 : index
    %c0_12 = arith.constant 0 : index
    %9 = vector.load %arg2[%c1_10, %c0_11, %c0_12] : memref<9x128x128xbf16, #tpu.memory_space<vmem>>, vector<1x128x128xbf16>
    %10 = vector.shape_cast %9 : vector<1x128x128xbf16> to vector<128x128xbf16>
    %cst_13 = arith.constant dense<0.000000e+00> : vector<128x128xf32>
    %11 = tpu.matmul %8, %10, %cst_13 {dimension_numbers = #tpu.dot_dimension_numbers<[1], [0], [0], [1], [0, 0, 1, 1], [], []>} : vector<128x128xbf16>, vector<128x128xbf16>, vector<128x128xf32> -> vector<128x128xf32>
    %12 = arith.addf %6, %11 : vector<128x128xf32>
    %c0_14 = arith.constant 0 : index
    %c0_15 = arith.constant 0 : index
    %c2 = arith.constant 2 : index
    %c0_16 = arith.constant 0 : index
    %13 = vector.load %arg1[%c0_14, %c0_15, %c2, %c0_16] : memref<1x10x18x128xbf16, #tpu.memory_space<vmem>>, vector<1x8x16x128xbf16>
    %14 = vector.shape_cast %13 : vector<1x8x16x128xbf16> to vector<128x128xbf16>
    %c2_17 = arith.constant 2 : index
    %c0_18 = arith.constant 0 : index
    %c0_19 = arith.constant 0 : index
    %15 = vector.load %arg2[%c2_17, %c0_18, %c0_19] : memref<9x128x128xbf16, #tpu.memory_space<vmem>>, vector<1x128x128xbf16>
    %16 = vector.shape_cast %15 : vector<1x128x128xbf16> to vector<128x128xbf16>
    %cst_20 = arith.constant dense<0.000000e+00> : vector<128x128xf32>
    %17 = tpu.matmul %14, %16, %cst_20 {dimension_numbers = #tpu.dot_dimension_numbers<[1], [0], [0], [1], [0, 0, 1, 1], [], []>} : vector<128x128xbf16>, vector<128x128xbf16>, vector<128x128xf32> -> vector<128x128xf32>
    %18 = arith.addf %12, %17 : vector<128x128xf32>
    %c0_21 = arith.constant 0 : index
    %c1_22 = arith.constant 1 : index
    %c0_23 = arith.constant 0 : index
    %c0_24 = arith.constant 0 : index
    %19 = vector.load %arg1[%c0_21, %c1_22, %c0_23, %c0_24] : memref<1x10x18x128xbf16, #tpu.memory_space<vmem>>, vector<1x8x16x128xbf16>
    %20 = vector.shape_cast %19 : vector<1x8x16x128xbf16> to vector<128x128xbf16>
    %c3 = arith.constant 3 : index
    %c0_25 = arith.constant 0 : index
    %c0_26 = arith.constant 0 : index
    %21 = vector.load %arg2[%c3, %c0_25, %c0_26] : memref<9x128x128xbf16, #tpu.memory_space<vmem>>, vector<1x128x128xbf16>
    %22 = vector.shape_cast %21 : vector<1x128x128xbf16> to vector<128x128xbf16>
    %cst_27 = arith.constant dense<0.000000e+00> : vector<128x128xf32>
    %23 = tpu.matmul %20, %22, %cst_27 {dimension_numbers = #tpu.dot_dimension_numbers<[1], [0], [0], [1], [0, 0, 1, 1], [], []>} : vector<128x128xbf16>, vector<128x128xbf16>, vector<128x128xf32> -> vector<128x128xf32>
    %24 = arith.addf %18, %23 : vector<128x128xf32>
    %c0_28 = arith.constant 0 : index
    %c1_29 = arith.constant 1 : index
    %c1_30 = arith.constant 1 : index
    %c0_31 = arith.constant 0 : index
    %25 = vector.load %arg1[%c0_28, %c1_29, %c1_30, %c0_31] : memref<1x10x18x128xbf16, #tpu.memory_space<vmem>>, vector<1x8x16x128xbf16>
    %26 = vector.shape_cast %25 : vector<1x8x16x128xbf16> to vector<128x128xbf16>
    %c4 = arith.constant 4 : index
    %c0_32 = arith.constant 0 : index
    %c0_33 = arith.constant 0 : index
    %27 = vector.load %arg2[%c4, %c0_32, %c0_33] : memref<9x128x128xbf16, #tpu.memory_space<vmem>>, vector<1x128x128xbf16>
    %28 = vector.shape_cast %27 : vector<1x128x128xbf16> to vector<128x128xbf16>
    %cst_34 = arith.constant dense<0.000000e+00> : vector<128x128xf32>
    %29 = tpu.matmul %26, %28, %cst_34 {dimension_numbers = #tpu.dot_dimension_numbers<[1], [0], [0], [1], [0, 0, 1, 1], [], []>} : vector<128x128xbf16>, vector<128x128xbf16>, vector<128x128xf32> -> vector<128x128xf32>
    %30 = arith.addf %24, %29 : vector<128x128xf32>
    %c0_35 = arith.constant 0 : index
    %c1_36 = arith.constant 1 : index
    %c2_37 = arith.constant 2 : index
    %c0_38 = arith.constant 0 : index
    %31 = vector.load %arg1[%c0_35, %c1_36, %c2_37, %c0_38] : memref<1x10x18x128xbf16, #tpu.memory_space<vmem>>, vector<1x8x16x128xbf16>
    %32 = vector.shape_cast %31 : vector<1x8x16x128xbf16> to vector<128x128xbf16>
    %c5 = arith.constant 5 : index
    %c0_39 = arith.constant 0 : index
    %c0_40 = arith.constant 0 : index
    %33 = vector.load %arg2[%c5, %c0_39, %c0_40] : memref<9x128x128xbf16, #tpu.memory_space<vmem>>, vector<1x128x128xbf16>
    %34 = vector.shape_cast %33 : vector<1x128x128xbf16> to vector<128x128xbf16>
    %cst_41 = arith.constant dense<0.000000e+00> : vector<128x128xf32>
    %35 = tpu.matmul %32, %34, %cst_41 {dimension_numbers = #tpu.dot_dimension_numbers<[1], [0], [0], [1], [0, 0, 1, 1], [], []>} : vector<128x128xbf16>, vector<128x128xbf16>, vector<128x128xf32> -> vector<128x128xf32>
    %36 = arith.addf %30, %35 : vector<128x128xf32>
    %c0_42 = arith.constant 0 : index
    %c2_43 = arith.constant 2 : index
    %c0_44 = arith.constant 0 : index
    %c0_45 = arith.constant 0 : index
    %37 = vector.load %arg1[%c0_42, %c2_43, %c0_44, %c0_45] : memref<1x10x18x128xbf16, #tpu.memory_space<vmem>>, vector<1x8x16x128xbf16>
    %38 = vector.shape_cast %37 : vector<1x8x16x128xbf16> to vector<128x128xbf16>
    %c6 = arith.constant 6 : index
    %c0_46 = arith.constant 0 : index
    %c0_47 = arith.constant 0 : index
    %39 = vector.load %arg2[%c6, %c0_46, %c0_47] : memref<9x128x128xbf16, #tpu.memory_space<vmem>>, vector<1x128x128xbf16>
    %40 = vector.shape_cast %39 : vector<1x128x128xbf16> to vector<128x128xbf16>
    %cst_48 = arith.constant dense<0.000000e+00> : vector<128x128xf32>
    %41 = tpu.matmul %38, %40, %cst_48 {dimension_numbers = #tpu.dot_dimension_numbers<[1], [0], [0], [1], [0, 0, 1, 1], [], []>} : vector<128x128xbf16>, vector<128x128xbf16>, vector<128x128xf32> -> vector<128x128xf32>
    %42 = arith.addf %36, %41 : vector<128x128xf32>
    %c0_49 = arith.constant 0 : index
    %c2_50 = arith.constant 2 : index
    %c1_51 = arith.constant 1 : index
    %c0_52 = arith.constant 0 : index
    %43 = vector.load %arg1[%c0_49, %c2_50, %c1_51, %c0_52] : memref<1x10x18x128xbf16, #tpu.memory_space<vmem>>, vector<1x8x16x128xbf16>
    %44 = vector.shape_cast %43 : vector<1x8x16x128xbf16> to vector<128x128xbf16>
    %c7 = arith.constant 7 : index
    %c0_53 = arith.constant 0 : index
    %c0_54 = arith.constant 0 : index
    %45 = vector.load %arg2[%c7, %c0_53, %c0_54] : memref<9x128x128xbf16, #tpu.memory_space<vmem>>, vector<1x128x128xbf16>
    %46 = vector.shape_cast %45 : vector<1x128x128xbf16> to vector<128x128xbf16>
    %cst_55 = arith.constant dense<0.000000e+00> : vector<128x128xf32>
    %47 = tpu.matmul %44, %46, %cst_55 {dimension_numbers = #tpu.dot_dimension_numbers<[1], [0], [0], [1], [0, 0, 1, 1], [], []>} : vector<128x128xbf16>, vector<128x128xbf16>, vector<128x128xf32> -> vector<128x128xf32>
    %48 = arith.addf %42, %47 : vector<128x128xf32>
    %c0_56 = arith.constant 0 : index
    %c2_57 = arith.constant 2 : index
    %c2_58 = arith.constant 2 : index
    %c0_59 = arith.constant 0 : index
    %49 = vector.load %arg1[%c0_56, %c2_57, %c2_58, %c0_59] : memref<1x10x18x128xbf16, #tpu.memory_space<vmem>>, vector<1x8x16x128xbf16>
    %50 = vector.shape_cast %49 : vector<1x8x16x128xbf16> to vector<128x128xbf16>
    %c8 = arith.constant 8 : index
    %c0_60 = arith.constant 0 : index
    %c0_61 = arith.constant 0 : index
    %51 = vector.load %arg2[%c8, %c0_60, %c0_61] : memref<9x128x128xbf16, #tpu.memory_space<vmem>>, vector<1x128x128xbf16>
    %52 = vector.shape_cast %51 : vector<1x128x128xbf16> to vector<128x128xbf16>
    %cst_62 = arith.constant dense<0.000000e+00> : vector<128x128xf32>
    %53 = tpu.matmul %50, %52, %cst_62 {dimension_numbers = #tpu.dot_dimension_numbers<[1], [0], [0], [1], [0, 0, 1, 1], [], []>} : vector<128x128xbf16>, vector<128x128xbf16>, vector<128x128xf32> -> vector<128x128xf32>
    %54 = arith.addf %48, %53 : vector<128x128xf32>
    %c0_63 = arith.constant 0 : index
    %c0_64 = arith.constant 0 : index
    %55 = vector.load %arg3[%c0_63, %c0_64] : memref<1x128xf32, #tpu.memory_space<vmem>>, vector<1x128xf32>
    %56 = vector.broadcast %55 : vector<1x128xf32> to vector<128x128xf32>
    %57 = arith.addf %54, %56 : vector<128x128xf32>
    %58 = vector.shape_cast %57 : vector<128x128xf32> to vector<1x8x16x128xf32>
    %c0_65 = arith.constant 0 : index
    %c0_66 = arith.constant 0 : index
    %c0_67 = arith.constant 0 : index
    %c0_68 = arith.constant 0 : index
    %59 = vector.load %arg4[%c0_65, %c0_66, %c0_67, %c0_68] : memref<1x8x16x128xf32, #tpu.memory_space<vmem>>, vector<1x8x16x128xf32>
    tpu.vector_store %arg4[%c0_65, %c0_66, %c0_67, %c0_68], %58 {strides = array<i32>} : memref<1x8x16x128xf32, #tpu.memory_space<vmem>>, vector<1x8x16x128xf32>,
    %cst_69 = arith.constant dense<0.000000e+00> : vector<128xf32>
    %60 = vector.multi_reduction <add>, %57, %cst_69 [0] : vector<128x128xf32> to vector<128xf32>
    %61 = vector.shape_cast %60 : vector<128xf32> to vector<1x128xf32>
    %62 = vector.shape_cast %61 : vector<1x128xf32> to vector<1x1x128xf32>
    %c0_70 = arith.constant 0 : index
    %c0_71 = arith.constant 0 : index
    %c0_72 = arith.constant 0 : index
    %63 = vector.load %arg5[%c0_70, %c0_71, %c0_72] : memref<1x2x128xf32, #tpu.memory_space<vmem>>, vector<1x1x128xf32>
    tpu.vector_store %arg5[%c0_70, %c0_71, %c0_72], %62 {strides = array<i32>} : memref<1x2x128xf32, #tpu.memory_space<vmem>>, vector<1x1x128xf32>,
    %64 = arith.mulf %57, %57 : vector<128x128xf32>
    %cst_73 = arith.constant dense<0.000000e+00> : vector<128xf32>
    %65 = vector.multi_reduction <add>, %64, %cst_73 [0] : vector<128x128xf32> to vector<128xf32>
    %66 = vector.shape_cast %65 : vector<128xf32> to vector<1x128xf32>
    %67 = vector.shape_cast %66 : vector<1x128xf32> to vector<1x1x128xf32>
    %c0_74 = arith.constant 0 : index
    %c1_75 = arith.constant 1 : index
    %c0_76 = arith.constant 0 : index
    %68 = vector.load %arg5[%c0_74, %c1_75, %c0_76] : memref<1x2x128xf32, #tpu.memory_space<vmem>>, vector<1x1x128xf32>
    tpu.vector_store %arg5[%c0_74, %c1_75, %c0_76], %67 {strides = array<i32>} : memref<1x2x128xf32, #tpu.memory_space<vmem>>, vector<1x1x128xf32>,
    return
  }
  func.func @transform_0(%arg0: i32) -> (i32, i32, i32, i32) {
    %c0_i32 = arith.constant 0 : i32
    %c0_i32_0 = arith.constant 0 : i32
    %c0_i32_1 = arith.constant 0 : i32
    %c0_i32_2 = arith.constant 0 : i32
    return %arg0, %c0_i32, %c0_i32_0, %c0_i32_1 : i32, i32, i32, i32
  }
  func.func @transform_1(%arg0: i32) -> (i32, i32, i32) {
    %c0_i32 = arith.constant 0 : i32
    %c0_i32_0 = arith.constant 0 : i32
    %c0_i32_1 = arith.constant 0 : i32
    %c0_i32_2 = arith.constant 0 : i32
    return %c0_i32, %c0_i32_0, %c0_i32_1 : i32, i32, i32
  }
  func.func @transform_2(%arg0: i32) -> (i32, i32) {
    %c0_i32 = arith.constant 0 : i32
    %c0_i32_0 = arith.constant 0 : i32
    %c0_i32_1 = arith.constant 0 : i32
    return %c0_i32, %c0_i32_0 : i32, i32
  }
  func.func @transform_3(%arg0: i32) -> (i32, i32, i32, i32) {
    %c0_i32 = arith.constant 0 : i32
    %c0_i32_0 = arith.constant 0 : i32
    %c0_i32_1 = arith.constant 0 : i32
    %c0_i32_2 = arith.constant 0 : i32
    return %arg0, %c0_i32, %c0_i32_0, %c0_i32_1 : i32, i32, i32, i32
  }
  func.func @transform_4(%arg0: i32) -> (i32, i32, i32) {
    %c0_i32 = arith.constant 0 : i32
    %c0_i32_0 = arith.constant 0 : i32
    %c0_i32_1 = arith.constant 0 : i32
    return %arg0, %c0_i32, %c0_i32_0 : i32, i32, i32
  }
}

</mosaic_0001>

<bundles_post_ra>
// kernel: residual_block_forward.2
= control target key start
LH: loop header
LB: loop body
LE: loop exit
PB: predicated region body
PF: predicated region fallthrough
CT: control target
= control target key end

     0   :  { %s3617_s15 = smov 0   ;;  %s4536_s0 = inlined_call_operand.vmem [shape: bf16[4,10,18,128], index: 0, kind: input, shape index: {}]   ;;  %s4537_s1 = inlined_call_operand.vmem [shape: bf16[9,128,128], index: 1, kind: input, shape index: {}]   ;;  %s4538_s2 = inlined_call_operand.vmem [shape: f32[1,128], index: 2, kind: input, shape index: {}]   ;;  %s4539_s3 = inlined_call_operand.vmem [shape: f32[4,8,16,128], index: 3, kind: output, shape index: {0}]   ;;  %s4540_s4 = inlined_call_operand.vmem [shape: f32[4,2,128], index: 4, kind: output, shape index: {1}]  }
   0x1 LB: > { %s2808_s16 = sadd.s32 4294967295, %s3590_s15   ;;  %p2812_p0 = scmp.ge.s32.totalorder %s3590_s15, 1  ;;  %s3590_s15 = sphi %s3617_s15, %s15_s15  }
   0x2   : > { %p165_p1 = scmp.lt.s32.totalorder %s3590_s15, 5 }
   0x4   : > { %p166_p2 = pnand %p2812_p0, %p165_p1 }
   0x5   : > { %p195_p3 = scmp.lt.s32.totalorder (!%p166_p2), %s2808_s16, 3 }
   0x6   : > { %169 = sbr.rel (%p166_p2) target bundleno = 480 (0x1e0), region = 32 }
   0xb   : > { %v3475_v0 = vld [vmem:[%s4537_s1 + $0x78] sm:$0xff]  ;;  %v3474_v1 = vld [vmem:[%s4537_s1 + $0x70] sm:$0xff]  ;;  %s4546_s16 = smov (!%p195_p3, %s2808_s16), 3  ;;  %v3473_v2 = vld [vmem:[%s4537_s1 + $0x68] sm:$0xff]  ;;  %vm249_vm0 = vsmask.f32 3328 }
   0xc   : > { %3548 = vmatpush.bf16.msra.mxu1 %v3475_v0  ;;  %3549 = vmatpush.bf16.msra.mxu2 %v3475_v0  ;;  %s3572_s21 = smul.u32 120, %s4546_s16  ;;  %vm250_vm1 = vsmask.f32 7440  ;;  %v3472_v6 = vld [vmem:[%s4537_s1 + $0x60] sm:$0xff]  ;;  %v3471_v35 = vld [vmem:[%s4537_s1 + $0x58] sm:$0xff]  ;;  %v3470_v54 = vld [vmem:[%s4537_s1 + $0x50] sm:$0xff] }
   0xd   : > { %3550 = vmatpush.bf16.msra.mxu3 %v3475_v0  ;;  %541 = vmatpush.bf16.msra.mxu0 %v3475_v0  ;;  %vm3669_vm2 = vmor %vm249_vm0, %vm250_vm1  ;;  %vm759_vm3 = vcmask 1042432   ;;  %vm760_vm4 = vcmask 1046532   ;;  %s2816_s6 = sshll.u32 %s4546_s16, 1 }
   0xe   : > { %s3640_s26 = scalar_lea.vmem %s4536_s0, %s3572_s21  ;;  %vm3880_vm5 = vmor %vm759_vm3, %vm760_vm4  ;;  %s208_s9 = scalar_lea.vmem %s4540_s4, %s2816_s6 }
   0xf   : > { %v213_v3 = vld [vmem:[%s3640_s26 + $0x18] sm:$0xf]  ;;  %v3644_v4 = vld [vmem:[%s3640_s26 + $0x1c] sm:$0xf]  ;;  %v3647_v5 = vld [vmem:[%s3640_s26 + $0x20] sm:$0x1] }
  0x10   : > { %3551 = vmatpush.bf16.msra.mxu1 %v3474_v1  ;;  %3552 = vmatpush.bf16.msra.mxu2 %v3474_v1  ;;  %v301_v7 = vshrl.u32 %v213_v3, 16  ;;  %v304_v8 = vshll.u32 %v213_v3, 16  ;;  %v310_v9 = vshll.u32 %v3644_v4, 16  ;;  %v314_v10 = vshrl.u32 %v3644_v4, 16  ;;  %v217_v11 = vld [vmem:[%s3640_s26 + $0x30] sm:$0xf] }
  0x11   : > { %3553 = vmatpush.bf16.msra.mxu3 %v3474_v1  ;;  %542 = vmatpush.bf16.msra.mxu0 %v3474_v1  ;;  %v320_v12 = vshll.u32 %v3647_v5, 16  ;;  %v3657_v13 = vld [vmem:[%s3640_s26 + $0x34] sm:$0xf]  ;;  %v3660_v14 = vld [vmem:[%s3640_s26 + $0x38] sm:$0x1]  ;;  %v349_v15 = vshrl.u32 %v217_v11, 16 }
  0x12   : > { %v303_v16 = vrot.slane %v301_v7, 4  ;;  %v306_v17 = vrot.slane %v304_v8, 5  ;;  %v312_v18 = vrot.slane %v310_v9, 5  ;;  %v316_v19 = vrot.slane %v314_v10, 4  ;;  %v221_v20 = vld [vmem:[%s3640_s26 + $0x48] sm:$0xf] }
  0x13   : > { %v322_v21 = vrot.slane %v320_v12, 5  ;;  %v351_v22 = vrot.slane %v349_v15, 4  ;;  %v352_v23 = vshll.u32 %v217_v11, 16  ;;  %v358_v24 = vshll.u32 %v3657_v13, 16  ;;  %v222_v29 = vld [vmem:[%s3640_s26 + $0x4c] sm:$0xf] }
  0x14   : > { %3554 = vmatpush.bf16.msra.mxu1 %v3473_v2  ;;  %3555 = vmatpush.bf16.msra.mxu2 %v3473_v2  ;;  %v307_v25 = vor.u32 %v306_v17, %v303_v16  ;;  %v317_v26 = vor.u32 %v316_v19, %v312_v18  ;;  %v362_v27 = vshrl.u32 %v3657_v13, 16  ;;  %v368_v28 = vshll.u32 %v3660_v14, 16  ;;  %v247_v41 = vld [vmem:[%s3640_s26 + $0x50] sm:$0x1]  ;;  %v209_v49 = vld [vmem:[%s3640_s26] sm:$0xf] }
  0x15   : > { %3556 = vmatpush.bf16.msra.mxu3 %v3473_v2  ;;  %543 = vmatpush.bf16.msra.mxu0 %v3473_v2  ;;  %v354_v31 = vrot.slane %v352_v23, 5  ;;  %v360_v32 = vrot.slane %v358_v24, 5  ;;  %v397_v33 = vshrl.u32 %v221_v20, 16  ;;  %v400_v34 = vshll.u32 %v221_v20, 16  ;;  %v3694_v62 = vld [vmem:[%s3640_s26 + $0x4] sm:$0xf] }
  0x16   : > { %v308_v36 = vrot.slane %v307_v25, 4  ;;  %v318_v37 = vrot.slane %v317_v26, 4  ;;  %v364_v38 = vrot.slane %v362_v27, 4  ;;  %v370_v39 = vrot.slane %v368_v28, 5  ;;  %v215_v7 = vld [vmem:[%s3640_s26 + $0x24] sm:$0xf] }
  0x17   : > { %v355_v40 = vor.u32 %v354_v31, %v351_v22  ;;  %v399_v42 = vrot.slane %v397_v33, 4  ;;  %v402_v43 = vrot.slane %v400_v34, 5  ;;  %v406_v44 = vshll.u32 %v222_v29, 16  ;;  %v3469_v12 = vld [vmem:[%s4537_s1 + $0x48] sm:$0xff] }
  0x18   : > { %3557 = vmatpush.bf16.msra.mxu1 %v3472_v6  ;;  %3558 = vmatpush.bf16.msra.mxu2 %v3472_v6  ;;  %v313_v45 = vsel %vm3669_vm2, %v308_v36, %v312_v18  ;;  %v323_v46 = vsel %vm3669_vm2, %v318_v37, %v322_v21  ;;  %v365_v47 = vor.u32 %v364_v38, %v360_v32  ;;  %v410_v48 = vshrl.u32 %v222_v29, 16  ;;  %v3716_v19 = vld [vmem:[%s3640_s26 + $0x28] sm:$0xf]  ;;  %v3722_v23 = vld [vmem:[%s3640_s26 + $0x2c] sm:$0x1] }
  0x19   : > { %3559 = vmatpush.bf16.msra.mxu3 %v3472_v6  ;;  %544 = vmatpush.bf16.msra.mxu0 %v3472_v6  ;;  %v3682_v50 = vunpack.c.l.b16 %v313_v45  ;;  %v3684_v51 = vunpack.c.l.b16 %v323_v46  ;;  %v356_v52 = vrot.slane %v355_v40, 4  ;;  %v403_v53 = vor.u32 %v402_v43, %v399_v42  ;;  %v3701_v6 = vld [vmem:[%s3640_s26 + $0x8] sm:$0x1]  ;;  %v219_v29 = vld [vmem:[%s3640_s26 + $0x3c] sm:$0xf] }
  0x1a   : > { %v366_v55 = vrot.slane %v365_v47, 4  ;;  %v408_v56 = vrot.slane %v406_v44, 5  ;;  %v412_v57 = vrot.slane %v410_v48, 4  ;;  %v416_v58 = vshll.u32 %v247_v41, 16  ;;  %v3483_v41 = vld [vmem:[%s4537_s1 + $0xb8] sm:$0xff] }
  0x1b   : > { %v479_v59 = vpack.c.b16 %v3684_v51, %v3682_v50  ;;  %v361_v60 = vsel %vm3669_vm2, %v356_v52, %v360_v32  ;;  %v404_v61 = vrot.slane %v403_v53, 4  ;;  %v253_v63 = vshrl.u32 %v209_v49, 16  ;;  %v3738_v44 = vld [vmem:[%s3640_s26 + $0x40] sm:$0xf]  ;;  %v3467_v46 = vld [vmem:[%s4537_s1 + $0x38] sm:$0xff] }
  0x1c   : > { %3560 = vmatpush.bf16.msra.mxu1 %v3471_v35  ;;  %3561 = vmatpush.bf16.msra.mxu2 %v3471_v35  ;;  %v371_v0 = vsel %vm3669_vm2, %v366_v55, %v370_v39  ;;  %v3698_v1 = vunpack.c.l.b16 %v361_v60  ;;  %v413_v2 = vor.u32 %v412_v57, %v408_v56  ;;  %v418_v3 = vrot.slane %v416_v58, 5  ;;  %v3744_v53 = vld [vmem:[%s3640_s26 + $0x44] sm:$0x1]  ;;  %v223_v58 = vld [vmem:[%s3640_s26 + $0x54] sm:$0xf] }
  0x1d   : > { %3562 = vmatpush.bf16.msra.mxu3 %v3471_v35  ;;  %545 = vmatpush.bf16.msra.mxu0 %v3471_v35  ;;  %v3704_v8 = vunpack.c.l.b16 %v371_v0  ;;  %v409_v9 = vsel %vm3669_vm2, %v404_v61, %v408_v56  ;;  %v255_v10 = vrot.slane %v253_v63, 4  ;;  %v256_v11 = vshll.u32 %v209_v49, 16  ;;  %v3468_v35 = vld [vmem:[%s4537_s1 + $0x40] sm:$0xff]  ;;  %v3507_v63 = vld [vmem:[%s4537_s1 + $0x138] sm:$0xff] }
  0x1e   : > { %v414_v15 = vrot.slane %v413_v2, 4  ;;  %v3711_v16 = vunpack.c.l.b16 %v409_v9  ;;  %v262_v17 = vshll.u32 %v3694_v62, 16  ;;  %v266_v18 = vshrl.u32 %v3694_v62, 16  ;;  %v3482_v9 = vld [vmem:[%s4537_s1 + $0xb0] sm:$0xff] }
  0x1f   : > { %v481_v20 = vpack.c.b16 %v3704_v8, %v3698_v1  ;;  %v258_v21 = vrot.slane %v256_v11, 5  ;;  %v272_v22 = vshll.u32 %v3701_v6, 16  ;;  %v325_v24 = vshrl.u32 %v215_v7, 16  ;;  %v3498_v8 = vld [vmem:[%s4537_s1 + $0xf0] sm:$0xff] }
  0x20   : > { %3563 = vmatpush.bf16.msra.mxu1 %v3470_v54  ;;  %3564 = vmatpush.bf16.msra.mxu2 %v3470_v54  ;;  %v419_v25 = vsel %vm3669_vm2, %v414_v15, %v418_v3  ;;  %v264_v26 = vrot.slane %v262_v17, 5  ;;  %v268_v27 = vrot.slane %v266_v18, 4  ;;  %v328_v28 = vshll.u32 %v215_v7, 16  ;;  %v3499_v3 = vld [vmem:[%s4537_s1 + $0xf8] sm:$0xff]  ;;  %v3466_v15 = vld [vmem:[%s4537_s1 + $0x30] sm:$0xff] }
  0x21   : > { %3565 = vmatpush.bf16.msra.mxu3 %v3470_v54  ;;  %546 = vmatpush.bf16.msra.mxu0 %v3470_v54  ;;  %v474_v31 = vunpack.c.l.b16 %v419_v25  ;;  %v259_v32 = vor.u32 %v258_v21, %v255_v10  ;;  %v274_v33 = vrot.slane %v272_v22, 5  ;;  %v327_v34 = vrot.slane %v325_v24, 4  ;;  %v3769_v21 = vld [vmem:[%s3640_s26 + $0x58] sm:$0xf] }
  0x22   : > { %v269_v36 = vor.u32 %v268_v27, %v264_v26  ;;  %v330_v37 = vrot.slane %v328_v28, 5  ;;  %v334_v38 = vshll.u32 %v3716_v19, 16  ;;  %v338_v39 = vshrl.u32 %v3716_v19, 16  ;;  %v3778_v27 = vld [vmem:[%s3640_s26 + $0x5c] sm:$0x1] }
  0x23   : > { %v483_v40 = vpack.c.b16 %v474_v31, %v3711_v16  ;;  %v260_v42 = vrot.slane %v259_v32, 4  ;;  %v344_v43 = vshll.u32 %v3722_v23, 16  ;;  %v373_v45 = vshrl.u32 %v219_v29, 16  ;;  %v211_v28 = vld [vmem:[%s3640_s26 + $0xc] sm:$0xf] }
  0x24   : > { %3566 = vmatpush.bf16.msra.mxu1 %v3469_v12  ;;  %3567 = vmatpush.bf16.msra.mxu2 %v3469_v12  ;;  %v270_v47 = vrot.slane %v269_v36, 4  ;;  %v331_v48 = vor.u32 %v330_v37, %v327_v34  ;;  %v336_v49 = vrot.slane %v334_v38, 5  ;;  %v340_v52 = vrot.slane %v338_v39, 4  ;;  %v3801_v39 = vld [vmem:[%s3640_s26 + $0x10] sm:$0xf] }
  0x25   : > { %3568 = vmatpush.bf16.msra.mxu3 %v3469_v12  ;;  %547 = vmatpush.bf16.msra.mxu0 %v3469_v12  ;;  %v265_v54 = vsel %vm3669_vm2, %v260_v42, %v264_v26  ;;  %v346_v55 = vrot.slane %v344_v43, 5  ;;  %v375_v56 = vrot.slane %v373_v45, 4  ;;  %v376_v57 = vshll.u32 %v219_v29, 16  ;;  %v3506_v29 = vld [vmem:[%s4537_s1 + $0x130] sm:$0xff] }
  0x26   : > { %v275_v60 = vsel %vm3669_vm2, %v270_v47, %v274_v33  ;;  %v461_v61 = vunpack.c.l.b16 %v265_v54  ;;  %v332_v0 = vrot.slane %v331_v48, 4  ;;  %v341_v2 = vor.u32 %v340_v52, %v336_v49  ;;  %v3505_v47 = vld [vmem:[%s4537_s1 + $0x128] sm:$0xff] }
  0x27   : > { %v462_v7 = vunpack.c.l.b16 %v275_v60  ;;  %v378_v10 = vrot.slane %v376_v57, 5  ;;  %v382_v11 = vshll.u32 %v3738_v44, 16  ;;  %v386_v12 = vshrl.u32 %v3738_v44, 16 }
  0x28   : > { %3569 = vmatpush.bf16.msra.mxu1 %v3468_v35  ;;  %3570 = vmatpush.bf16.msra.mxu2 %v3468_v35  ;;  %v337_v16 = vsel %vm3669_vm2, %v332_v0, %v336_v49  ;;  %v342_v17 = vrot.slane %v341_v2, 4  ;;  %v392_v18 = vshll.u32 %v3744_v53, 16  ;;  %v421_v22 = vshrl.u32 %v223_v58, 16 }
  0x29   : > { %3571 = vmatpush.bf16.msra.mxu3 %v3468_v35  ;;  %548 = vmatpush.bf16.msra.mxu0 %v3468_v35  ;;  %v477_v24 = vpack.c.b16 %v462_v7, %v461_v61  ;;  %v379_v25 = vor.u32 %v378_v10, %v375_v56  ;;  %v384_v26 = vrot.slane %v382_v11, 5  ;;  %v3786_v51 = vunpack.c.l.b16 %v337_v16  ;;  %v3465_v35 = vld [vmem:[%s4537_s1 + $0x28] sm:$0xff]  ;;  %v3480_v61 = vld [vmem:[%s4537_s1 + $0xa0] sm:$0xff] }
  0x2a   : > { %v347_v50 = vsel %vm3669_vm2, %v342_v17, %v346_v55  ;;  %v394_v1 = vrot.slane %v392_v18, 5  ;;  %v423_v32 = vrot.slane %v421_v22, 4  ;;  %v424_v33 = vshll.u32 %v223_v58, 16  ;;  %v3497_v55 = vld [vmem:[%s4537_s1 + $0xe8] sm:$0xff]  ;;  %v3496_v18 = vld [vmem:[%s4537_s1 + $0xe0] sm:$0xff] }
  0x2b   : > { %559 = vmatmul.bf16.vlgmr.msra.gmra.mxu1 %v479_v59  ;;  %569 = vmatmul.bf16.vlgmr.msra.gmra.mxu2 %v481_v20  ;;  %v388_v59 = vrot.slane %v386_v12, 4  ;;  %v3481_v20 = vld [vmem:[%s4537_s1 + $0xa8] sm:$0xff]  ;;  %v380_v31 = vrot.slane %v379_v25, 4  ;;  %v430_v34 = vshll.u32 %v3769_v21, 16  ;;  %v434_v37 = vshrl.u32 %v3769_v21, 16 }
  0x2c   : > { %915 = vmatpush.bf16.msrb.mxu2 %v3483_v41  ;;  %686 = vmatpush.bf16.msrb.mxu1 %v3467_v46  ;;  %v440_v38 = vshll.u32 %v3778_v27, 16  ;;  %v3803_v41 = vunpack.c.l.b16 %v347_v50  ;;  %v426_v43 = vrot.slane %v424_v33, 5  ;;  %v3808_v46 = vld [vmem:[%s3640_s26 + $0x14] sm:$0x1]  ;;  %v280_v58 = vshll.u32 %v211_v28, 16 }
  0x2d   : > { %579 = vmatmul.bf16.vlgmr.msra.gmra.mxu3 %v483_v40  ;;  %1488 = vmatpush.bf16.msrb.mxu0 %v3507_v63  ;;  %v389_v36 = vor.u32 %v388_v59, %v384_v26  ;;  %v277_v40 = vshrl.u32 %v211_v28, 16  ;;  %v385_v42 = vsel %vm3669_vm2, %v380_v31, %v384_v26  ;;  %v432_v45 = vrot.slane %v430_v34, 5  ;;  %v3464_v63 = vld [vmem:[%s4537_s1 + $0x20] sm:$0xff]  ;;  %v3081_v26 = vld [vmem:[%s3640_s26 + $0xc] sm:$0xf]  ;;  %v3479_v59 = vld [vmem:[%s4537_s1 + $0x98] sm:$0xff] }
  0x2e   : > { %1110 = vmatpush.bf16.msrb.mxu3 %v3499_v3  ;;  %549 = vmatmul.bf16.vlgmr.msra.gmra.mxu0 %v477_v24  ;;  %v3813_v49 = vunpack.c.l.b16 %v385_v42  ;;  %v436_v52 = vrot.slane %v434_v37, 4  ;;  %v442_v54 = vrot.slane %v440_v38, 5  ;;  %v427_v56 = vor.u32 %v426_v43, %v423_v32  ;;  %v3841_v28 = vld [vmem:[%s3640_s26 + $0x10] sm:$0xf]  ;;  %v735_v33 = vld [vmem:[%s3640_s26] sm:$0xe] }
  0x2f   : > { %v390_v48 = vrot.slane %v389_v36, 4  ;;  %v279_v57 = vrot.slane %v277_v40, 4  ;;  %v286_v60 = vshll.u32 %v3801_v39, 16  ;;  %v290_v3 = vshrl.u32 %v3801_v39, 16  ;;  %v3503_v36 = vld [vmem:[%s4537_s1 + $0x118] sm:$0xff] }
  0x30   : > { %916 = vmatpush.bf16.msrb.mxu2 %v3482_v9  ;;  %687 = vmatpush.bf16.msrb.mxu1 %v3466_v15  ;;  %v437_v2 = vor.u32 %v436_v52, %v432_v45  ;;  %v296_v7 = vshll.u32 %v3808_v46, 16  ;;  %v428_v10 = vrot.slane %v427_v56, 4  ;;  %v282_v11 = vrot.slane %v280_v58, 5  ;;  %v3504_v15 = vld [vmem:[%s4537_s1 + $0x120] sm:$0xff]  ;;  %v3495_v42 = vld [vmem:[%s4537_s1 + $0xd8] sm:$0xff] }
  0x31   : > { %1489 = vmatpush.bf16.msrb.mxu0 %v3506_v29  ;;  %v395_v0 = vsel %vm3669_vm2, %v390_v48, %v394_v1  ;;  %v288_v12 = vrot.slane %v286_v60, 5  ;;  %v292_v17 = vrot.slane %v290_v3, 4  ;;  %v480_v22 = vpack.c.b16 %v3803_v41, %v3786_v51  ;;  %v3463_v51 = vld [vmem:[%s4537_s1 + $0x18] sm:$0xff]  ;;  %v3478_v48 = vld [vmem:[%s4537_s1 + $0x90] sm:$0xff] }
  0x32   : > { %1111 = vmatpush.bf16.msrb.mxu3 %v3498_v8  ;;  %v472_v9 = vunpack.c.l.b16 %v395_v0  ;;  %v438_v16 = vrot.slane %v437_v2, 4  ;;  %v433_v24 = vsel %vm3669_vm2, %v428_v10, %v432_v45  ;;  %v283_v25 = vor.u32 %v282_v11, %v279_v57  ;;  %v3502_v60 = vld [vmem:[%s4537_s1 + $0x110] sm:$0xff]  ;;  %v3461_v10 = vld [vmem:[%s4537_s1 + $0x8] sm:$0xff] }
  0x33   : > { %v475_v50 = vunpack.c.l.b16 %v433_v24  ;;  %v293_v1 = vor.u32 %v292_v17, %v288_v12  ;;  %v298_v8 = vrot.slane %v296_v7, 5  ;;  %v764_v34 = vrot.slane %v3694_v62, 5  ;;  %v3864_v62 = vld [vmem:[%s3640_s26 + $0x14] sm:$0x1]  ;;  %v3084_v24 = vld [vmem:[%s3640_s26 + $0x18] sm:$0xf] }
  0x34   : > { %917 = vmatpush.bf16.msrb.mxu2 %v3481_v20  ;;  %688 = vmatpush.bf16.msrb.mxu1 %v3465_v35  ;;  %v443_v29 = vsel %vm3669_vm2, %v438_v16, %v442_v54  ;;  %v482_v20 = vpack.c.b16 %v472_v9, %v3813_v49  ;;  %v284_v32 = vrot.slane %v283_v25, 4  ;;  %v1200_v37 = vshrl.u32 %v3081_v26, 16  ;;  %v3462_v49 = vld [vmem:[%s4537_s1 + $0x10] sm:$0xff]  ;;  %v3477_v9 = vld [vmem:[%s4537_s1 + $0x88] sm:$0xff]  ;;  %v3904_v25 = vld [vmem:[%s3640_s26 + $0x1c] sm:$0xf] }
  0x35   : > { %1490 = vmatpush.bf16.msrb.mxu0 %v3505_v47  ;;  %v476_v31 = vunpack.c.l.b16 %v443_v29  ;;  %v294_v35 = vrot.slane %v293_v1, 4  ;;  %v1203_v38 = vshll.u32 %v3081_v26, 16  ;;  %v1209_v40 = vshll.u32 %v3841_v28, 16  ;;  %v3494_v3 = vld [vmem:[%s4537_s1 + $0xd0] sm:$0xff]  ;;  %v3493_v26 = vld [vmem:[%s4537_s1 + $0xc8] sm:$0xff]  ;;  %v3476_v29 = vld [vmem:[%s4537_s1 + $0x80] sm:$0xff] }
  0x36   : > { %1112 = vmatpush.bf16.msrb.mxu3 %v3497_v55  ;;  %v289_v43 = vsel %vm3669_vm2, %v284_v32, %v288_v12  ;;  %v2929_v52 = vrot.slane %v735_v33, 9  ;;  %v1202_v54 = vrot.slane %v1200_v37, 4  ;;  %v766_v56 = vrot.slane %v764_v34, 4  ;;  %v3501_v12 = vld [vmem:[%s4537_s1 + $0x108] sm:$0xff] }
  0x37   : > { %v484_v41 = vpack.c.b16 %v476_v31, %v475_v50  ;;  %v299_v45 = vsel %vm3669_vm2, %v294_v35, %v298_v8  ;;  %v463_v47 = vunpack.c.l.b16 %v289_v43  ;;  %v767_v57 = vrot.slane %v3701_v6, 5  ;;  %v3460_v50 = vld [vmem:[%s4537_s1] sm:$0xff]  ;;  %v3531_v8 = vld [vmem:[%s4537_s1 + $0x1b8] sm:$0xff] }
  0x38   : > { %918 = vmatpush.bf16.msrb.mxu2 %v3480_v61  ;;  %689 = vmatpush.bf16.msrb.mxu1 %v3464_v63  ;;  %v464_v55 = vunpack.c.l.b16 %v299_v45  ;;  %v1205_v58 = vrot.slane %v1203_v38, 5  ;;  %v1211_v63 = vrot.slane %v1209_v40, 5  ;;  %v1213_v0 = vshrl.u32 %v3841_v28, 16  ;;  %v3492_v40 = vld [vmem:[%s4537_s1 + $0xc0] sm:$0xff]  ;;  %v737_v43 = vld [vmem:[%s3640_s26 + $0x18] sm:$0xe] }
  0x39   : > { %1491 = vmatpush.bf16.msrb.mxu0 %v3504_v15  ;;  %v1219_v2 = vshll.u32 %v3864_v62, 16  ;;  %v765_v15 = vsel %vm3880_vm5, %v2929_v52, %v764_v34  ;;  %v768_v16 = vsel %vm3880_vm5, %v766_v56, %v767_v57  ;;  %v1224_v31 = vshrl.u32 %v3084_v24, 16  ;;  %v3500_v34 = vld [vmem:[%s4537_s1 + $0x100] sm:$0xff]  ;;  %v3484_v57 = vld [vmem:[%s3640_s26 + $0xc] sm:$0xff] }
  0x3a   : > { %1113 = vmatpush.bf16.msrb.mxu3 %v3496_v18  ;;  %v478_v6 = vpack.c.b16 %v464_v55, %v463_v47  ;;  %v1206_v7 = vor.u32 %v1205_v58, %v1202_v54  ;;  %v1215_v11 = vrot.slane %v1213_v0, 4  ;;  %v1227_v32 = vshll.u32 %v3084_v24, 16  ;;  %v3452_v52 = vld [vmem:[%s3640_s26] sm:$0xff]  ;;  %v736_v58 = vld [vmem:[%s3640_s26 + $0xc] sm:$0xe] }
  0x3b   : > { %564 = vmatmul.bf16.gmra.mxu1 %v480_v22  ;;  %574 = vmatmul.bf16.gmra.mxu2 %v482_v20  ;;  %v1221_v22 = vrot.slane %v1219_v2, 5  ;;  %v3515_v20 = vld [vmem:[%s4537_s1 + $0x178] sm:$0xff]  ;;  %v1233_v33 = vshll.u32 %v3904_v25, 16  ;;  %v1237_v37 = vshrl.u32 %v3904_v25, 16  ;;  %v778_v38 = vrot.slane %v3644_v4, 5 }
  0x3c   : > { %919 = vmatpush.bf16.msrb.mxu2 %v3479_v59  ;;  %690 = vmatpush.bf16.msrb.mxu1 %v3463_v51  ;;  %v1207_v17 = vrot.slane %v1206_v7, 4  ;;  %v1216_v18 = vor.u32 %v1215_v11, %v1211_v63  ;;  %v835_v59 = vunpack.c.l.b16 %v765_v15  ;;  %v836_v51 = vunpack.c.l.b16 %v768_v16  ;;  %v3539_v4 = vld [vmem:[%s4537_s1 + $0x1f8] sm:$0xff]  ;;  %v3546_v7 = vld [vmem:[%s4537_s1 + $0x230] sm:$0xff] }
  0x3d   : > { %584 = vmatmul.bf16.gmra.mxu3 %v484_v41  ;;  %1492 = vmatpush.bf16.msrb.mxu0 %v3503_v36  ;;  %v3547_v41 = vld [vmem:[%s4537_s1 + $0x238] sm:$0xff]  ;;  %v2931_v47 = vrot.slane %v737_v43, 9  ;;  %v1229_v56 = vrot.slane %v1227_v32, 5  ;;  %v1239_v0 = vrot.slane %v1237_v37, 4  ;;  %v3538_v11 = vld [vmem:[%s4537_s1 + $0x1f0] sm:$0xff]  ;;  %v2930_v15 = vrot.slane %v736_v58, 9 }
  0x3e   : > { %1114 = vmatpush.bf16.msrb.mxu3 %v3495_v42  ;;  %554 = vmatmul.bf16.gmra.mxu0 %v478_v6  ;;  %v1217_v1 = vrot.slane %v1216_v18, 4  ;;  %v1212_v35 = vsel %vm3669_vm2, %v1207_v17, %v1211_v63  ;;  %v771_v42 = vrot.slane %v3801_v39, 5  ;;  %v851_v45 = vpack.c.b16 %v836_v51, %v835_v59  ;;  %v3956_v6 = vld [vmem:[%s3640_s26 + $0x20] sm:$0x1]  ;;  %v3977_v59 = vld [vmem:[%s3640_s26 + $0x28] sm:$0xf] }
  0x3f   : > { %v1408_v54 = vunpack.c.l.b16 %v1212_v35  ;;  %v1226_v39 = vrot.slane %v1224_v31, 4  ;;  %v3949_v63 = vrot.slane %v1233_v33, 5  ;;  %v774_v16 = vrot.slane %v3808_v46, 5  ;;  %v3537_v51 = vld [vmem:[%s4537_s1 + $0x1e8] sm:$0xff] }
  0x40   : > { %920 = vmatpush.bf16.msrb.mxu2 %v3478_v48  ;;  %691 = vmatpush.bf16.msrb.mxu1 %v3462_v49  ;;  %v1222_v36 = vsel %vm3669_vm2, %v1217_v1, %v1221_v22  ;;  %v780_v48 = vrot.slane %v778_v38, 4  ;;  %v781_v49 = vrot.slane %v3647_v5, 5  ;;  %v779_v5 = vsel %vm3880_vm5, %v2931_v47, %v778_v38  ;;  %v3513_v1 = vld [vmem:[%s4537_s1 + $0x168] sm:$0xff] }
  0x41   : > { %1493 = vmatpush.bf16.msrb.mxu0 %v3502_v60  ;;  %v1409_v55 = vunpack.c.l.b16 %v1222_v36  ;;  %v3530_v60 = vld [vmem:[%s4537_s1 + $0x1b0] sm:$0xff]  ;;  %v773_v18 = vrot.slane %v771_v42, 4  ;;  %v1230_v22 = vor.u32 %v1229_v56, %v1226_v39  ;;  %v1240_v24 = vor.u32 %v1239_v0, %v3949_v63 }
  0x42   : > { %1115 = vmatpush.bf16.msrb.mxu3 %v3494_v3  ;;  %v782_v2 = vsel %vm3880_vm5, %v780_v48, %v781_v49  ;;  %v3514_v3 = vld [vmem:[%s4537_s1 + $0x170] sm:$0xff]  ;;  %v772_v46 = vsel %vm3880_vm5, %v2930_v15, %v771_v42  ;;  %v1257_v36 = vshll.u32 %v3977_v59, 16  ;;  %v1261_v37 = vshrl.u32 %v3977_v59, 16  ;;  %v738_v48 = vld [vmem:[%s3640_s26 + $0x24] sm:$0xe] }
  0x43   : > { %v1231_v31 = vrot.slane %v1230_v22, 4  ;;  %v1241_v32 = vrot.slane %v1240_v24, 4  ;;  %v837_v38 = vunpack.c.l.b16 %v772_v46  ;;  %v785_v43 = vrot.slane %v3716_v19, 5  ;;  %v3453_v39 = vld [vmem:[%s3640_s26 + $0xc] sm:$0xff]  ;;  %v3512_v22 = vld [vmem:[%s4537_s1 + $0x160] sm:$0xff] }
  0x44   : > { %921 = vmatpush.bf16.msrb.mxu2 %v3477_v9  ;;  %692 = vmatpush.bf16.msrb.mxu1 %v3461_v10  ;;  %v839_v9 = vunpack.c.l.b16 %v779_v5  ;;  %v840_v10 = vunpack.c.l.b16 %v782_v2  ;;  %v1259_v47 = vrot.slane %v1257_v36, 5  ;;  %v1263_v49 = vrot.slane %v1261_v37, 4  ;;  %v3544_v24 = vld [vmem:[%s4537_s1 + $0x220] sm:$0xff] }
  0x45   : > { %1494 = vmatpush.bf16.msrb.mxu0 %v3501_v12  ;;  %v1424_v12 = vpack.c.b16 %v1409_v55, %v1408_v54  ;;  %v787_v54 = vrot.slane %v785_v43, 4  ;;  %v788_v55 = vrot.slane %v3722_v23, 5 }
  0x46   : > { %1116 = vmatpush.bf16.msrb.mxu3 %v3493_v26  ;;  %v3968_v17 = vpack.c.b16 %v840_v10, %v839_v9  ;;  %v1243_v26 = vshll.u32 %v3956_v6, 16 }
  0x47   : > { %v789_v19 = vsel %vm3880_vm5, %v787_v54, %v788_v55  ;;  %v3543_v54 = vld [vmem:[%s4537_s1 + $0x218] sm:$0xff] }
  0x48   : > { %922 = vmatpush.bf16.msrb.mxu2 %v3476_v29  ;;  %693 = vmatpush.bf16.msrb.mxu1 %v3460_v50  ;;  %v3529_v29 = vld [vmem:[%s4537_s1 + $0x1a8] sm:$0xff]  ;;  %v3087_v50 = vld [vmem:[%s3640_s26 + $0x24] sm:$0xf]  ;;  %v1245_v33 = vrot.slane %v1243_v26, 5  ;;  %v842_v2 = vunpack.c.l.b16 %v789_v19  ;;  %v3090_v26 = vld [vmem:[%s3640_s26 + $0x30] sm:$0xf] }
  0x49   : > { %1495 = vmatpush.bf16.msrb.mxu0 %v3500_v34  ;;  %v1248_v34 = vshrl.u32 %v3087_v50, 16  ;;  %v1251_v35 = vshll.u32 %v3087_v50, 16  ;;  %v3093_v55 = vld [vmem:[%s3640_s26 + $0x3c] sm:$0xf] }
  0x4a   : > { %1117 = vmatpush.bf16.msrb.mxu3 %v3492_v40  ;;  %v1246_v42 = vsel %vm3669_vm2, %v1241_v32, %v1245_v33  ;;  %v3454_v33 = vld [vmem:[%s3640_s26 + $0x18] sm:$0xff] }
  0x4b   : > { %694 = vmatmul.bf16.vlgmr.msrb.gmra.mxu1 %v3452_v52  ;;  %923 = vmatmul.bf16.vlgmr.msrb.gmra.mxu2 %v851_v45  ;;  %v1250_v45 = vrot.slane %v1248_v34, 4  ;;  %v2932_v52 = vrot.slane %v738_v48, 9  ;;  %v1411_v58 = vunpack.c.l.b16 %v1246_v42 }
  0x4c   : > { %1933 = vmatpush.bf16.msra.mxu2 %v3531_v8  ;;  %1738 = vmatpush.bf16.msra.mxu1 %v3515_v20  ;;  %v3545_v8 = vld [vmem:[%s4537_s1 + $0x228] sm:$0xff]  ;;  %v775_v20 = vsel %vm3880_vm5, %v773_v18, %v774_v16  ;;  %v3536_v18 = vld [vmem:[%s4537_s1 + $0x1e0] sm:$0xff] }
  0x4d   : > { %2561 = vmatpush.bf16.msra.mxu0 %v3547_v41  ;;  %1118 = vmatmul.bf16.vlgmr.msrb.gmra.mxu3 %v3484_v57  ;;  %v838_v40 = vunpack.c.l.b16 %v775_v20  ;;  %v1236_v41 = vsel %vm3669_vm2, %v1231_v31, %v3949_v63  ;;  %v3485_v63 = vld [vmem:[%s3640_s26 + $0x18] sm:$0xff]  ;;  %v786_v0 = vsel %vm3880_vm5, %v2932_v52, %v785_v43 }
  0x4e   : > { %2311 = vmatpush.bf16.msra.mxu3 %v3539_v4  ;;  %1496 = vmatmul.bf16.vlgmr.msrb.gmra.mxu0 %v1424_v12  ;;  %v1253_v4 = vrot.slane %v1251_v35, 5  ;;  %v1410_v57 = vunpack.c.l.b16 %v1236_v41  ;;  %v841_v5 = vunpack.c.l.b16 %v786_v0  ;;  %v3511_v52 = vld [vmem:[%s4537_s1 + $0x158] sm:$0xff] }
  0x4f   : > { %v852_v56 = vpack.c.b16 %v838_v40, %v837_v38  ;;  %v3486_v38 = vld [vmem:[%s3640_s26 + $0x24] sm:$0xff]  ;;  %v4039_v40 = vld [vmem:[%s3640_s26 + $0x38] sm:$0x1] }
  0x50   : > { %1934 = vmatpush.bf16.msra.mxu2 %v3530_v60  ;;  %1739 = vmatpush.bf16.msra.mxu1 %v3514_v3  ;;  %v4004_v60 = vld [vmem:[%s3640_s26 + $0x2c] sm:$0x1]  ;;  %v1254_v3 = vor.u32 %v1253_v4, %v1250_v45  ;;  %v1425_v9 = vpack.c.b16 %v1411_v58, %v1410_v57  ;;  %v4012_v10 = vpack.c.b16 %v842_v2, %v841_v5  ;;  %v1291_v45 = vshll.u32 %v4039_v40, 16  ;;  %v3527_v4 = vld [vmem:[%s4537_s1 + $0x198] sm:$0xff]  ;;  %v3455_v5 = vld [vmem:[%s3640_s26 + $0x24] sm:$0xff] }
  0x51   : > { %2562 = vmatpush.bf16.msra.mxu0 %v3546_v7  ;;  %v1264_v7 = vor.u32 %v1263_v49, %v1259_v47  ;;  %v1267_v23 = vshll.u32 %v4004_v60, 16  ;;  %v1296_v58 = vshrl.u32 %v3093_v55, 16  ;;  %v3487_v2 = vld [vmem:[%s3640_s26 + $0x30] sm:$0xff] }
  0x52   : > { %2312 = vmatpush.bf16.msra.mxu3 %v3538_v11  ;;  %v3528_v11 = vld [vmem:[%s4537_s1 + $0x1a0] sm:$0xff]  ;;  %v1255_v12 = vrot.slane %v1254_v3, 4  ;;  %v1293_v49 = vrot.slane %v1291_v45, 5 }
  0x53   : > { %v1265_v15 = vrot.slane %v1264_v7, 4  ;;  %v1269_v16 = vrot.slane %v1267_v23, 5  ;;  %v792_v23 = vrot.slane %v3657_v13, 5 }
  0x54   : > { %1935 = vmatpush.bf16.msra.mxu2 %v3529_v29  ;;  %1740 = vmatpush.bf16.msra.mxu1 %v3513_v1  ;;  %v4028_v29 = vld [vmem:[%s3640_s26 + $0x34] sm:$0xf]  ;;  %v1260_v50 = vsel %vm3669_vm2, %v1255_v12, %v1259_v47  ;;  %v1275_v1 = vshll.u32 %v3090_v26, 16 }
  0x55   : > { %2563 = vmatpush.bf16.msra.mxu0 %v3545_v8  ;;  %v1270_v46 = vsel %vm3669_vm2, %v1265_v15, %v1269_v16  ;;  %v1281_v8 = vshll.u32 %v4028_v29, 16  ;;  %v1285_v20 = vshrl.u32 %v4028_v29, 16  ;;  %v1412_v31 = vunpack.c.l.b16 %v1260_v50 }
  0x56   : > { %2313 = vmatpush.bf16.msra.mxu3 %v3537_v51  ;;  %v1272_v51 = vshrl.u32 %v3090_v26, 16  ;;  %v1413_v32 = vunpack.c.l.b16 %v1270_v46  ;;  %v1277_v35 = vrot.slane %v1275_v1, 5  ;;  %v794_v26 = vrot.slane %v792_v23, 4  ;;  %v3526_v1 = vld [vmem:[%s4537_s1 + $0x190] sm:$0xff] }
  0x57   : > { %v1283_v36 = vrot.slane %v1281_v8, 5  ;;  %v1287_v37 = vrot.slane %v1285_v20, 4  ;;  %v795_v50 = vrot.slane %v3660_v14, 5  ;;  %v3096_v8 = vld [vmem:[%s3640_s26 + $0x48] sm:$0xf]  ;;  %v3534_v14 = vld [vmem:[%s4537_s1 + $0x1d0] sm:$0xff] }
  0x58   : > { %1936 = vmatpush.bf16.msra.mxu2 %v3528_v11  ;;  %1741 = vmatpush.bf16.msra.mxu1 %v3512_v22  ;;  %v1274_v34 = vrot.slane %v1272_v51, 4  ;;  %v1426_v41 = vpack.c.b16 %v1413_v32, %v1412_v31  ;;  %v1298_v11 = vrot.slane %v1296_v58, 4  ;;  %v4080_v20 = vld [vmem:[%s3640_s26 + $0x4c] sm:$0xf]  ;;  %v3510_v31 = vld [vmem:[%s4537_s1 + $0x150] sm:$0xff]  ;;  %v799_v58 = vrot.slane %v3738_v44, 5 }
  0x59   : > { %2564 = vmatpush.bf16.msra.mxu0 %v3544_v24  ;;  %v1288_v43 = vor.u32 %v1287_v37, %v1283_v36  ;;  %v3542_v32 = vld [vmem:[%s4537_s1 + $0x210] sm:$0xff]  ;;  %v1320_v37 = vshrl.u32 %v3096_v8, 16  ;;  %v3525_v44 = vld [vmem:[%s4537_s1 + $0x188] sm:$0xff] }
  0x5a   : > { %2314 = vmatpush.bf16.msra.mxu3 %v3536_v18  ;;  %v1278_v42 = vor.u32 %v1277_v35, %v1274_v34  ;;  %v4070_v18 = vld [vmem:[%s3640_s26 + $0x44] sm:$0x1] }
  0x5b   : > { %699 = vmatmul.bf16.gmra.mxu1 %v3453_v39  ;;  %928 = vmatmul.bf16.gmra.mxu2 %v852_v56  ;;  %v1289_v48 = vrot.slane %v1288_v43, 4  ;;  %v4057_v39 = vld [vmem:[%s3640_s26 + $0x40] sm:$0xf]  ;;  %v1315_v51 = vshll.u32 %v4070_v18, 16 }
  0x5c   : > { %1937 = vmatpush.bf16.msra.mxu2 %v3527_v4  ;;  %v1279_v47 = vrot.slane %v1278_v42, 4  ;;  %1742 = vmatpush.bf16.msra.mxu1 %v3511_v52  ;;  %v1305_v0 = vshll.u32 %v4057_v39, 16  ;;  %v1309_v19 = vshrl.u32 %v4057_v39, 16  ;;  %v1333_v42 = vshrl.u32 %v4080_v20, 16 }
  0x5d   : > { %1123 = vmatmul.bf16.gmra.mxu3 %v3485_v63  ;;  %2565 = vmatpush.bf16.msra.mxu0 %v3543_v54  ;;  %v1294_v57 = vsel %vm3669_vm2, %v1289_v48, %v1293_v49  ;;  %v1299_v63 = vshll.u32 %v3093_v55, 16  ;;  %v1322_v48 = vrot.slane %v1320_v37, 4  ;;  %v3456_v54 = vld [vmem:[%s3640_s26 + $0x30] sm:$0xff]  ;;  %v3457_v37 = vld [vmem:[%s3640_s26 + $0x3c] sm:$0xff] }
  0x5e   : > { %1501 = vmatmul.bf16.gmra.mxu0 %v1425_v9  ;;  %v1284_v56 = vsel %vm3669_vm2, %v1279_v47, %v1283_v36  ;;  %v1415_v7 = vunpack.c.l.b16 %v1294_v57  ;;  %v739_v9 = vld [vmem:[%s3640_s26 + $0x30] sm:$0xe]  ;;  %v1307_v15 = vrot.slane %v1305_v0, 5  ;;  %v1311_v16 = vrot.slane %v1309_v19, 4  ;;  %v3488_v0 = vld [vmem:[%s3640_s26 + $0x3c] sm:$0xff] }
  0x5f   : > { %v1414_v3 = vunpack.c.l.b16 %v1284_v56  ;;  %v1301_v12 = vrot.slane %v1299_v63, 5  ;;  %v2933_v24 = vrot.slane %v739_v9, 9  ;;  %v1317_v36 = vrot.slane %v1315_v51, 5  ;;  %v4104_v63 = vld [vmem:[%s3640_s26 + $0x50] sm:$0x1] }
  0x60   : > { %v1312_v13 = vor.u32 %v1311_v16, %v1307_v15  ;;  %1938 = vmatpush.bf16.msra.mxu2 %v3526_v1  ;;  %1743 = vmatpush.bf16.msra.mxu1 %v3510_v31  ;;  %v1335_v52 = vrot.slane %v1333_v42, 4  ;;  %v740_v19 = vld [vmem:[%s3640_s26 + $0x3c] sm:$0xe]  ;;  %v801_v9 = vrot.slane %v799_v58, 4 }
  0x61   : > { %v1427_v22 = vpack.c.b16 %v1415_v7, %v1414_v3  ;;  %v1302_v46 = vor.u32 %v1301_v12, %v1298_v11  ;;  %2566 = vmatpush.bf16.msra.mxu0 %v3542_v32  ;;  %v1339_v3 = vshll.u32 %v4104_v63, 16  ;;  %v802_v11 = vrot.slane %v3744_v53, 5  ;;  %v3533_v53 = vld [vmem:[%s4537_s1 + $0x1c8] sm:$0xff] }
  0x62   : > { %v1313_v35 = vrot.slane %v1312_v13, 4 }
  0x63   : > { %v1303_v34 = vrot.slane %v1302_v46, 4  ;;  %v1341_v16 = vrot.slane %v1339_v3, 5  ;;  %v4125_v46 = vld [vmem:[%s3640_s26 + $0x58] sm:$0xf] }
  0x64   : > { %v1318_v47 = vsel %vm3669_vm2, %v1313_v35, %v1317_v36  ;;  %1939 = vmatpush.bf16.msra.mxu2 %v3525_v44  ;;  %v1353_v32 = vshll.u32 %v4125_v46, 16  ;;  %v3102_v44 = vld [vmem:[%s3640_s26 + $0x60] sm:$0xf] }
  0x65   : > { %v1308_v4 = vsel %vm3669_vm2, %v1303_v34, %v1307_v15  ;;  %v1417_v57 = vunpack.c.l.b16 %v1318_v47 }
  0x66   : > { %v1416_v56 = vunpack.c.l.b16 %v1308_v4  ;;  %v1355_v42 = vrot.slane %v1353_v32, 5  ;;  %v3582_v4 = vld [vmem:[%s3640_s26 + $0x4c] sm:$0xf]  ;;  %v813_v32 = vrot.slane %v3769_v21, 5  ;;  %v3313_v21 = vld [vmem:[%s3640_s26 + $0x18] sm:$0xf] }
  0x67   : > { %v806_v47 = vrot.slane %v3582_v4, 5 }
  0x68   : > { %v1428_v7 = vpack.c.b16 %v1417_v57, %v1416_v56  ;;  %v815_v4 = vrot.slane %v813_v32, 4 }
  0x69   : > { %v808_v57 = vrot.slane %v806_v47, 4 }
  0x6b   : > { %704 = vmatmul.bf16.gmra.mxu1 %v3454_v33  ;;  %933 = vmatmul.bf16.gmra.mxu2 %v3968_v17  ;;  %v3535_v17 = vld [vmem:[%s4537_s1 + $0x1d8] sm:$0xff]  ;;  %v796_v33 = vsel %vm3880_vm5, %v794_v26, %v795_v50  ;;  %v3509_v26 = vld [vmem:[%s4537_s1 + $0x148] sm:$0xff]  ;;  %v3099_v50 = vld [vmem:[%s3640_s26 + $0x54] sm:$0xf] }
  0x6c   : > { %2315 = vmatpush.bf16.msra.mxu3 %v3535_v17  ;;  %v844_v45 = vunpack.c.l.b16 %v796_v33  ;;  %1744 = vmatpush.bf16.msra.mxu1 %v3509_v26  ;;  %v1347_v31 = vshll.u32 %v3099_v50, 16  ;;  %v1357_v33 = vshrl.u32 %v4125_v46, 16  ;;  %v1371_v26 = vshll.u32 %v3102_v44, 16 }
  0x6d   : > { %1128 = vmatmul.bf16.gmra.mxu3 %v3486_v38  ;;  %v1323_v38 = vshll.u32 %v3096_v8, 16 }
  0x6e   : > { %1506 = vmatmul.bf16.gmra.mxu0 %v1426_v41  ;;  %v1329_v41 = vshll.u32 %v4080_v20, 16 }
  0x6f   : > { %v1325_v49 = vrot.slane %v1323_v38, 5 }
  0x70   : > { %2316 = vmatpush.bf16.msra.mxu3 %v3534_v14  ;;  %v1331_v17 = vrot.slane %v1329_v41, 5  ;;  %v1344_v14 = vshrl.u32 %v3099_v50, 16  ;;  %v1349_v41 = vrot.slane %v1347_v31, 5 }
  0x72   : > { %v1346_v38 = vrot.slane %v1344_v14, 4 }
  0x74   : > { %2317 = vmatpush.bf16.msra.mxu3 %v3533_v53  ;;  %v1368_v53 = vshrl.u32 %v3102_v44, 16 }
  0x7b   : > { %709 = vmatmul.bf16.gmra.mxu1 %v3455_v5  ;;  %938 = vmatmul.bf16.gmra.mxu2 %v4012_v10  ;;  %v793_v10 = vsel %vm3880_vm5, %v2933_v24, %v792_v23  ;;  %v1326_v5 = vor.u32 %v1325_v49, %v1322_v48  ;;  %v2934_v23 = vrot.slane %v740_v19, 9  ;;  %v803_v24 = vsel %vm3880_vm5, %v801_v9, %v802_v11  ;;  %v4140_v48 = vld [vmem:[%s3640_s26 + $0x5c] sm:$0x1]  ;;  %v741_v49 = vld [vmem:[%s3640_s26 + $0x48] sm:$0xe]  ;;  %v3524_v19 = vld [vmem:[%s4537_s1 + $0x180] sm:$0xff] }
  0x7c   : > { %v843_v43 = vunpack.c.l.b16 %v793_v10  ;;  %v846_v51 = vunpack.c.l.b16 %v803_v24  ;;  %v3541_v10 = vld [vmem:[%s4537_s1 + $0x208] sm:$0xff]  ;;  %v2935_v56 = vrot.slane %v741_v49, 9  ;;  %1940 = vmatpush.bf16.msra.mxu2 %v3524_v19 }
  0x7d   : > { %1133 = vmatmul.bf16.gmra.mxu3 %v3487_v2  ;;  %v1336_v2 = vor.u32 %v1335_v52, %v1331_v17  ;;  %v1327_v12 = vrot.slane %v1326_v5, 4  ;;  %2567 = vmatpush.bf16.msra.mxu0 %v3541_v10  ;;  %v1350_v52 = vor.u32 %v1349_v41, %v1346_v38  ;;  %v3490_v10 = vld [vmem:[%s3640_s26 + $0x54] sm:$0xff]  ;;  %v4178_v41 = vld [vmem:[%s3640_s26 + $0x68] sm:$0x1] }
  0x7e   : > { %1511 = vmatmul.bf16.gmra.mxu0 %v1427_v22  ;;  %v855_v55 = vpack.c.b16 %v844_v45, %v843_v43  ;;  %v800_v22 = vsel %vm3880_vm5, %v2934_v23, %v799_v58  ;;  %v1359_v43 = vrot.slane %v1357_v33, 4  ;;  %v3489_v45 = vld [vmem:[%s3640_s26 + $0x48] sm:$0xff]  ;;  %v3583_v58 = vld [vmem:[%s3640_s26 + $0x50] sm:$0x1]  ;;  %v3508_v23 = vld [vmem:[%s4537_s1 + $0x140] sm:$0xff]  ;;  %v807_v9 = vsel %vm3880_vm5, %v2935_v56, %v806_v47 }
  0x7f   : > { %v1337_v15 = vrot.slane %v1336_v2, 4  ;;  %v845_v13 = vunpack.c.l.b16 %v800_v22  ;;  %v1332_v1 = vsel %vm3669_vm2, %v1327_v12, %v1331_v17  ;;  %v1351_v5 = vrot.slane %v1350_v52, 4  ;;  %v4160_v12 = vld [vmem:[%s3640_s26 + $0x64] sm:$0xf]  ;;  %1745 = vmatpush.bf16.msra.mxu1 %v3508_v23 }
  0x80   : > { %v1418_v35 = vunpack.c.l.b16 %v1332_v1  ;;  %v1377_v50 = vshll.u32 %v4160_v12, 16  ;;  %v3458_v1 = vld [vmem:[%s3640_s26 + $0x48] sm:$0xff]  ;;  %v816_v47 = vrot.slane %v3778_v27, 5  ;;  %v1387_v52 = vshll.u32 %v4178_v41, 16 }
  0x81   : > { %v1342_v8 = vsel %vm3669_vm2, %v1337_v15, %v1341_v16  ;;  %v856_v34 = vpack.c.b16 %v846_v51, %v845_v13  ;;  %v847_v15 = vunpack.c.l.b16 %v807_v9  ;;  %v1356_v22 = vsel %vm3669_vm2, %v1351_v5, %v1355_v42  ;;  %v3540_v51 = vld [vmem:[%s4537_s1 + $0x200] sm:$0xff] }
  0x82   : > { %v1419_v36 = vunpack.c.l.b16 %v1342_v8  ;;  %v1381_v13 = vshrl.u32 %v4160_v12, 16  ;;  %2568 = vmatpush.bf16.msra.mxu0 %v3540_v51  ;;  %v1420_v14 = vunpack.c.l.b16 %v1356_v22  ;;  %v2023_v56 = vshrl.u32 %v3313_v21, 16 }
  0x83   : > { %v817_v27 = vsel %vm3880_vm5, %v815_v4, %v816_v47  ;;  %v1389_v23 = vrot.slane %v1387_v52, 5 }
  0x84   : > { %v1429_v17 = vpack.c.b16 %v1419_v36, %v1418_v35  ;;  %v1370_v35 = vrot.slane %v1368_v53, 4  ;;  %v1373_v36 = vrot.slane %v1371_v26, 5  ;;  %v1383_v38 = vrot.slane %v1381_v13, 4 }
  0x85   : > { %v850_v44 = vunpack.c.l.b16 %v817_v27 }
  0x86   : > { %v1374_v49 = vor.u32 %v1373_v36, %v1370_v35 }
  0x8b   : > { %714 = vmatmul.bf16.gmra.mxu1 %v3456_v54  ;;  %943 = vmatmul.bf16.gmra.mxu2 %v855_v55  ;;  %v1360_v54 = vor.u32 %v1359_v43, %v1355_v42  ;;  %v1363_v55 = vshll.u32 %v4140_v48, 16 }
  0x8d   : > { %1138 = vmatmul.bf16.gmra.mxu3 %v3488_v0  ;;  %v809_v0 = vrot.slane %v3583_v58, 5  ;;  %v1361_v2 = vrot.slane %v1360_v54, 4  ;;  %v1365_v3 = vrot.slane %v1363_v55, 5  ;;  %v4186_v54 = vld [vmem:[%s3640_s26 + $0x1c] sm:$0xf] }
  0x8e   : > { %1516 = vmatmul.bf16.gmra.mxu0 %v1428_v7  ;;  %v3532_v7 = vld [vmem:[%s4537_s1 + $0x1c0] sm:$0xff]  ;;  %v2032_v19 = vshll.u32 %v4186_v54, 16  ;;  %v2036_v5 = vshrl.u32 %v4186_v54, 16 }
  0x8f   : > { %v810_v11 = vsel %vm3880_vm5, %v808_v57, %v809_v0  ;;  %2318 = vmatpush.bf16.msra.mxu3 %v3532_v7  ;;  %v1366_v24 = vsel %vm3669_vm2, %v1361_v2, %v1365_v3  ;;  %v2026_v57 = vshll.u32 %v3313_v21, 16  ;;  %v1375_v3 = vrot.slane %v1374_v49, 4 }
  0x90   : > { %v848_v16 = vunpack.c.l.b16 %v810_v11  ;;  %v1421_v31 = vunpack.c.l.b16 %v1366_v24  ;;  %v2034_v22 = vrot.slane %v2032_v19, 5  ;;  %v2038_v24 = vrot.slane %v2036_v5, 4 }
  0x92   : > { %v857_v8 = vpack.c.b16 %v848_v16, %v847_v15  ;;  %v1430_v43 = vpack.c.b16 %v1421_v31, %v1420_v14  ;;  %v2025_v15 = vrot.slane %v2023_v56, 4  ;;  %v2028_v16 = vrot.slane %v2026_v57, 5  ;;  %v3459_v14 = vld [vmem:[%s3640_s26 + $0x54] sm:$0xff]  ;;  %v3316_v57 = vld [vmem:[%s3640_s26 + $0x24] sm:$0xf] }
  0x93   : > { %v2039_v35 = vor.u32 %v2038_v24, %v2034_v22  ;;  %v3385_v56 = vld [vmem:[%s3640_s26 + $0x18] sm:$0xe] }
  0x95   : > { %v2040_v21 = vrot.slane %v2039_v35, 4 }
  0x9b   : > { %719 = vmatmul.bf16.gmra.mxu1 %v3457_v37  ;;  %948 = vmatmul.bf16.gmra.mxu2 %v856_v34  ;;  %v742_v34 = vld [vmem:[%s3640_s26 + $0x54] sm:$0xe]  ;;  %v1379_v37 = vrot.slane %v1377_v50, 5  ;;  %v3315_v50 = vld [vmem:[%s3640_s26 + $0x20] sm:$0x1] }
  0x9c   : > { %v2042_v36 = vshll.u32 %v3315_v50, 16 }
  0x9d   : > { %1143 = vmatmul.bf16.gmra.mxu3 %v3489_v45  ;;  %v2936_v45 = vrot.slane %v742_v34, 9  ;;  %v1380_v53 = vsel %vm3669_vm2, %v1375_v3, %v1379_v37  ;;  %v3153_v34 = vld [vmem:[%s3640_s26 + $0xc] sm:$0xe] }
  0x9e   : > { %1521 = vmatmul.bf16.gmra.mxu0 %v1429_v17  ;;  %v1384_v17 = vor.u32 %v1383_v38, %v1379_v37  ;;  %v1422_v31 = vunpack.c.l.b16 %v1380_v53  ;;  %v3491_v38 = vld [vmem:[%s3640_s26 + $0x60] sm:$0xff]  ;;  %v2044_v49 = vrot.slane %v2042_v36, 5  ;;  %v1594_v36 = vrot.slane %v3904_v25, 5 }
  0x9f   : > { %v814_v0 = vsel %vm3880_vm5, %v2936_v45, %v813_v32  ;;  %v3161_v45 = vrot.slane %v3153_v34, 9 }
  0xa0   : > { %v1385_v7 = vrot.slane %v1384_v17, 4  ;;  %v849_v11 = vunpack.c.l.b16 %v814_v0  ;;  %v2410_v17 = vrot.slane %v4186_v54, 5  ;;  %v4224_v0 = vld [vmem:[%s3640_s26 + $0x28] sm:$0xf]  ;;  %v2045_v3 = vsel %vm3669_vm2, %v2040_v21, %v2044_v49 }
  0xa1   : > { %v2056_v24 = vshll.u32 %v4224_v0, 16  ;;  %v2060_v53 = vshrl.u32 %v4224_v0, 16 }
  0xa2   : > { %v1390_v26 = vsel %vm3669_vm2, %v1385_v7, %v1389_v23  ;;  %v858_v51 = vpack.c.b16 %v850_v44, %v849_v11  ;;  %v3393_v7 = vrot.slane %v3385_v56, 9  ;;  %v2412_v23 = vrot.slane %v2410_v17, 4 }
  0xa3   : > { %v1423_v32 = vunpack.c.l.b16 %v1390_v26  ;;  %v2413_v11 = vrot.slane %v3315_v50, 5  ;;  %v2058_v34 = vrot.slane %v2056_v24, 5  ;;  %v2062_v35 = vrot.slane %v2060_v53, 4 }
  0xa5   : > { %v1431_v47 = vpack.c.b16 %v1423_v32, %v1422_v31  ;;  %v2414_v50 = vsel %vm3880_vm5, %v2412_v23, %v2413_v11  ;;  %v2417_v23 = vrot.slane %v4224_v0, 5 }
  0xa6   : > { %v2482_v49 = vunpack.c.l.b16 %v2414_v50 }
  0xa8   : > { %v4174_v33 = vpop.f32.mrf.mxu1 }
  0xab   : > { %v4180_v42 = vpop.f32.mrf.mxu0  ;;  %724 = vmatmul.bf16.gmra.mxu1 %v3458_v1  ;;  %953 = vmatmul.bf16.gmra.mxu2 %v857_v8  ;;  %v1587_v1 = vrot.slane %v3841_v28, 5  ;;  %v2029_v8 = vor.u32 %v2028_v16, %v2025_v15  ;;  %v2047_v15 = vshrl.u32 %v3316_v57, 16  ;;  %v2050_v16 = vshll.u32 %v3316_v57, 16 }
  0xad   : > { %1148 = vmatmul.bf16.gmra.mxu3 %v3490_v10  ;;  %v1589_v4 = vrot.slane %v1587_v1, 4  ;;  %v2030_v28 = vrot.slane %v2029_v8, 4  ;;  %v2411_v8 = vsel %vm3880_vm5, %v3393_v7, %v2410_v17  ;;  %v2049_v31 = vrot.slane %v2047_v15, 4  ;;  %v3386_v15 = vld [vmem:[%s3640_s26 + $0x24] sm:$0xe] }
  0xae   : > { %v4188_v55 = vpop.f32.mrf.mxu2  ;;  %1526 = vmatmul.bf16.gmra.mxu0 %v1430_v43  ;;  %v1590_v43 = vrot.slane %v3864_v62, 5  ;;  %v1588_v62 = vsel %vm3880_vm5, %v3161_v45, %v1587_v1  ;;  %v2232_v1 = vunpack.c.l.b16 %v2045_v3  ;;  %v2052_v32 = vrot.slane %v2050_v16, 5  ;;  %v3154_v45 = vld [vmem:[%s3640_s26 + $0x18] sm:$0xe]  ;;  %v3319_v16 = vld [vmem:[%s3640_s26 + $0x30] sm:$0xf] }
  0xaf   : > { %v2035_v5 = vsel %vm3669_vm2, %v2030_v28, %v2034_v22  ;;  %v1658_v22 = vunpack.c.l.b16 %v1588_v62  ;;  %v2481_v21 = vunpack.c.l.b16 %v2411_v8  ;;  %v2063_v62 = vor.u32 %v2062_v35, %v2058_v34 }
  0xb0   : > { %v4190_v58 = vpop.f32.mrf.mxu3  ;;  %v4198_v2 = vpop.f32.mrf.mxu1  ;;  %v1591_v19 = vsel %vm3880_vm5, %v1589_v4, %v1590_v43  ;;  %v2053_v57 = vor.u32 %v2052_v32, %v2049_v31  ;;  %v1596_v3 = vrot.slane %v1594_v36, 4  ;;  %v1597_v7 = vrot.slane %v3956_v6, 5 }
  0xb1   : > { %v1659_v26 = vunpack.c.l.b16 %v1591_v19  ;;  %v2497_v11 = vpack.c.b16 %v2482_v49, %v2481_v21  ;;  %v3394_v0 = vrot.slane %v3386_v15, 9  ;;  %v2419_v8 = vrot.slane %v2417_v23, 4 }
  0xb2   : > { %v2054_v53 = vrot.slane %v2053_v57, 4  ;;  %v2071_v31 = vshrl.u32 %v3319_v16, 16 }
  0xb3   : > { %v4200_v9 = vpop.f32.mrf.mxu0  ;;  %v1674_v28 = vpack.c.b16 %v1659_v26, %v1658_v22  ;;  %v4262_v22 = vld [vmem:[%s3640_s26 + $0x34] sm:$0xf] }
  0xb6   : > { %v4207_v13 = vpop.f32.mrf.mxu2 }
  0xb8   : > { %v4210_v10 = vpop.f32.mrf.mxu3  ;;  %v4214_v37 = vpop.f32.mrf.mxu1 }
  0xbb   : > { %729 = vmatmul.bf16.gmra.mxu1 %v3459_v14  ;;  %958 = vmatmul.bf16.gmra.mxu2 %v858_v51  ;;  %v4219_v52 = vpop.f32.mrf.mxu0  ;;  %v2231_v51 = vunpack.c.l.b16 %v2035_v5  ;;  %v3162_v5 = vrot.slane %v3154_v45, 9  ;;  %v2074_v45 = vshll.u32 %v3319_v16, 16  ;;  %v3321_v16 = vld [vmem:[%s3640_s26 + $0x38] sm:$0x1] }
  0xbd   : > { %1153 = vmatmul.bf16.gmra.mxu3 %v3491_v38  ;;  %v3318_v38 = vld [vmem:[%s3640_s26 + $0x2c] sm:$0x1]  ;;  %v2247_v56 = vpack.c.b16 %v2232_v1, %v2231_v51  ;;  %v1595_v26 = vsel %vm3880_vm5, %v3162_v5, %v1594_v36  ;;  %v2064_v51 = vrot.slane %v2063_v62, 4  ;;  %v2059_v36 = vsel %vm3669_vm2, %v2054_v53, %v2058_v34 }
  0xbe   : > { %v4226_v27 = vpop.f32.mrf.mxu2  ;;  %1531 = vmatmul.bf16.gmra.mxu0 %v1431_v47  ;;  %v3516_v47 = vld [vmem:[%s3640_s26 + $0x18] sm:$0xff]  ;;  %v2066_v19 = vshll.u32 %v3318_v38, 16  ;;  %v2420_v50 = vrot.slane %v3318_v38, 5  ;;  %v2418_v62 = vsel %vm3880_vm5, %v3394_v0, %v2417_v23  ;;  %v2076_v5 = vrot.slane %v2074_v45, 5  ;;  %v3517_v0 = vld [vmem:[%s3640_s26 + $0x24] sm:$0xff] }
  0xbf   : > { %v1601_v23 = vrot.slane %v3977_v59, 5 }
  0xc0   : > { %v4234_v54 = vpop.f32.mrf.mxu3  ;;  %v4238_v44 = vpop.f32.mrf.mxu1  ;;  %v2068_v6 = vrot.slane %v2066_v19, 5  ;;  %v2421_v19 = vsel %vm3880_vm5, %v2419_v8, %v2420_v50  ;;  %v3155_v8 = vld [vmem:[%s3640_s26 + $0x24] sm:$0xe] }
  0xc2   : > { %v2069_v38 = vsel %vm3669_vm2, %v2064_v51, %v2068_v6  ;;  %v2484_v51 = vunpack.c.l.b16 %v2421_v19 }
  0xc3   : > { %v4246_v14 = vpop.f32.mrf.mxu0  ;;  %v2234_v15 = vunpack.c.l.b16 %v2069_v38 }
  0xc6   : > { %v4250_v43 = vpop.f32.mrf.mxu2 }
  0xc8   : > { %v4253_v4 = vpop.f32.mrf.mxu3  ;;  %v695_v17 = vpop.f32.mrf.mxu1 }
  0xc9   : > { %v696_v25 = vadd.f32 %v695_v17, %v4180_v42  ;;  %v1598_v42 = vsel %vm3880_vm5, %v1596_v3, %v1597_v7 }
  0xca   : > { %v1661_v57 = vunpack.c.l.b16 %v1598_v42  ;;  %v2483_v42 = vunpack.c.l.b16 %v2418_v62  ;;  %v2424_v62 = vrot.slane %v4262_v22, 5 }
  0xcb   : > { %1746 = vmatmul.bf16.vlgmr.msra.gmra.mxu1 %v1674_v28  ;;  %1941 = vmatmul.bf16.vlgmr.msra.gmra.mxu2 %v3516_v47  ;;  %v1497_v24 = vpop.f32.mrf.mxu0  ;;  %v2080_v28 = vshll.u32 %v4262_v22, 16  ;;  %v2084_v47 = vshrl.u32 %v4262_v22, 16 }
  0xcc   : > { %v2498_v59 = vpack.c.b16 %v2484_v51, %v2483_v42  ;;  %v2426_v42 = vrot.slane %v2424_v62, 4  ;;  %v2427_v51 = vrot.slane %v3321_v16, 5 }
  0xcd   : > { %2319 = vmatmul.bf16.vlgmr.msra.gmra.mxu3 %v2247_v56  ;;  %v1660_v56 = vunpack.c.l.b16 %v1595_v26  ;;  %v2082_v34 = vrot.slane %v2080_v28, 5  ;;  %v2086_v3 = vrot.slane %v2084_v47, 4  ;;  %v3163_v47 = vrot.slane %v3155_v8, 9 }
  0xce   : > { %v924_v1 = vpop.f32.mrf.mxu2  ;;  %2569 = vmatmul.bf16.vlgmr.msra.gmra.mxu0 %v2497_v11  ;;  %v2233_v11 = vunpack.c.l.b16 %v2059_v36  ;;  %v1604_v36 = vrot.slane %v4004_v60, 5 }
  0xcf   : > { %v964_v32 = vadd.f32 %v924_v1, %v696_v25  ;;  %v2073_v25 = vrot.slane %v2071_v31, 4  ;;  %v1675_v26 = vpack.c.b16 %v1661_v57, %v1660_v56  ;;  %v2087_v31 = vor.u32 %v2086_v3, %v2082_v34  ;;  %v3387_v57 = vld [vmem:[%s3640_s26 + $0x30] sm:$0xe]  ;;  %v4297_v3 = vld [vmem:[%s3640_s26 + $0x40] sm:$0xf] }
  0xd0   : > { %v1119_v35 = vpop.f32.mrf.mxu3  ;;  %v697_v21 = vpop.f32.mrf.mxu1  ;;  %v2104_v8 = vshll.u32 %v4297_v3, 16 }
  0xd1   : > { %v1159_v49 = vadd.f32 %v1119_v35, %v964_v32  ;;  %v698_v17 = vadd.f32 %v697_v21, %v4200_v9  ;;  %v2077_v50 = vor.u32 %v2076_v5, %v2073_v25  ;;  %v2090_v32 = vshll.u32 %v3321_v16, 16  ;;  %v3322_v25 = vld [vmem:[%s3640_s26 + $0x3c] sm:$0xf] }
  0xd2   : > { %v2248_v35 = vpack.c.b16 %v2234_v15, %v2233_v11  ;;  %v1603_v21 = vrot.slane %v1601_v23, 4  ;;  %v1602_v5 = vsel %vm3880_vm5, %v3163_v47, %v1601_v23  ;;  %v2098_v23 = vshll.u32 %v3322_v25, 16 }
  0xd3   : > { %v4279_v7 = vadd.f32 %v1497_v24, %v1159_v49  ;;  %v1499_v9 = vpop.f32.mrf.mxu0  ;;  %v2078_v49 = vrot.slane %v2077_v50, 4  ;;  %v2092_v56 = vrot.slane %v2090_v32, 5  ;;  %v2108_v50 = vshrl.u32 %v4297_v3, 16 }
  0xd4   : > { %v1605_v60 = vsel %vm3880_vm5, %v1603_v21, %v1604_v36  ;;  %v2100_v47 = vrot.slane %v2098_v23, 5  ;;  %v2106_v21 = vrot.slane %v2104_v8, 5  ;;  %v3325_v8 = vld [vmem:[%s3640_s26 + $0x48] sm:$0xf] }
  0xd5   : > { %v1663_v32 = vunpack.c.l.b16 %v1605_v60  ;;  %v2110_v36 = vrot.slane %v2108_v50, 4  ;;  %v3156_v60 = vld [vmem:[%s3640_s26 + $0x30] sm:$0xe] }
  0xd6   : > { %v926_v53 = vpop.f32.mrf.mxu2 }
  0xd7   : > { %v965_v6 = vadd.f32 %v926_v53, %v698_v17  ;;  %v2088_v17 = vrot.slane %v2087_v31, 4  ;;  %v2083_v53 = vsel %vm3669_vm2, %v2078_v49, %v2082_v34  ;;  %v1662_v31 = vunpack.c.l.b16 %v1602_v5 }
  0xd8   : > { %v1121_v1 = vpop.f32.mrf.mxu3  ;;  %v700_v24 = vpop.f32.mrf.mxu1  ;;  %v2235_v34 = vunpack.c.l.b16 %v2083_v53  ;;  %v1608_v49 = vrot.slane %v4028_v29, 5  ;;  %v3164_v29 = vrot.slane %v3156_v60, 9 }
  0xd9   : > { %v1160_v45 = vadd.f32 %v1121_v1, %v965_v6  ;;  %v701_v28 = vadd.f32 %v700_v24, %v4219_v52  ;;  %v2093_v22 = vsel %vm3669_vm2, %v2088_v17, %v2092_v56  ;;  %v2095_v6 = vshrl.u32 %v3322_v25, 16  ;;  %v3324_v17 = vld [vmem:[%s3640_s26 + $0x44] sm:$0x1]  ;;  %v3518_v25 = vld [vmem:[%s3640_s26 + $0x30] sm:$0xff] }
  0xda   : > { %v2236_v24 = vunpack.c.l.b16 %v2093_v22 }
  0xdb   : > { %1751 = vmatmul.bf16.gmra.mxu1 %v1675_v26  ;;  %1946 = vmatmul.bf16.gmra.mxu2 %v3517_v0  ;;  %v1502_v38 = vpop.f32.mrf.mxu0  ;;  %v4289_v19 = vadd.f32 %v1499_v9, %v1160_v45  ;;  %v3395_v9 = vrot.slane %v3387_v57, 9 }
  0xdd   : > { %2324 = vmatmul.bf16.gmra.mxu3 %v2248_v35  ;;  %v2425_v16 = vsel %vm3880_vm5, %v3395_v9, %v2424_v62  ;;  %v2111_v9 = vor.u32 %v2110_v36, %v2106_v21  ;;  %v2434_v36 = vrot.slane %v3324_v17, 5 }
  0xde   : > { %v929_v52 = vpop.f32.mrf.mxu2  ;;  %2574 = vmatmul.bf16.gmra.mxu0 %v2498_v59 }
  0xdf   : > { %v966_v11 = vadd.f32 %v929_v52, %v701_v28  ;;  %v2097_v28 = vrot.slane %v2095_v6, 4  ;;  %v2485_v52 = vunpack.c.l.b16 %v2425_v16  ;;  %v2431_v6 = vrot.slane %v4297_v3, 5 }
  0xe0   : > { %v1124_v15 = vpop.f32.mrf.mxu3  ;;  %v702_v26 = vpop.f32.mrf.mxu1 }
  0xe1   : > { %v1161_v1 = vadd.f32 %v1124_v15, %v966_v11  ;;  %v703_v0 = vadd.f32 %v702_v26, %v4246_v14  ;;  %v2428_v14 = vsel %vm3880_vm5, %v2426_v42, %v2427_v51  ;;  %v2249_v11 = vpack.c.b16 %v2236_v24, %v2235_v34  ;;  %v4324_v34 = vld [vmem:[%s3640_s26 + $0x4c] sm:$0xf] }
  0xe2   : > { %v2486_v5 = vunpack.c.l.b16 %v2428_v14  ;;  %v2101_v15 = vor.u32 %v2100_v47, %v2097_v28  ;;  %v2114_v26 = vshll.u32 %v3324_v17, 16  ;;  %v1610_v42 = vrot.slane %v1608_v49, 4 }
  0xe3   : > { %v4306_v35 = vadd.f32 %v1502_v38, %v1161_v1  ;;  %v1504_v45 = vpop.f32.mrf.mxu0  ;;  %v1676_v38 = vpack.c.b16 %v1663_v32, %v1662_v31  ;;  %v1611_v51 = vrot.slane %v4039_v40, 5  ;;  %v3388_v1 = vld [vmem:[%s3640_s26 + $0x3c] sm:$0xe]  ;;  %v1609_v40 = vsel %vm3880_vm5, %v3164_v29, %v1608_v49 }
  0xe4   : > { %v2499_v23 = vpack.c.b16 %v2486_v5, %v2485_v52  ;;  %v2102_v31 = vrot.slane %v2101_v15, 4  ;;  %v2116_v32 = vrot.slane %v2114_v26, 5  ;;  %v3396_v16 = vrot.slane %v3388_v1, 9 }
  0xe5   : > { %v1612_v3 = vsel %vm3880_vm5, %v1610_v42, %v1611_v51  ;;  %v2433_v14 = vrot.slane %v2431_v6, 4  ;;  %v1664_v60 = vunpack.c.l.b16 %v1609_v40  ;;  %v3327_v42 = vld [vmem:[%s3640_s26 + $0x50] sm:$0x1] }
  0xe6   : > { %v931_v59 = vpop.f32.mrf.mxu2  ;;  %v2107_v52 = vsel %vm3669_vm2, %v2102_v31, %v2106_v21  ;;  %v2432_v17 = vsel %vm3880_vm5, %v3396_v16, %v2431_v6 }
  0xe7   : > { %v967_v56 = vadd.f32 %v931_v59, %v703_v0  ;;  %v2122_v59 = vshll.u32 %v3325_v8, 16 }
  0xe8   : > { %v1126_v57 = vpop.f32.mrf.mxu3  ;;  %v705_v62 = vpop.f32.mrf.mxu1 }
  0xe9   : > { %v1162_v53 = vadd.f32 %v1126_v57, %v967_v56  ;;  %v706_v22 = vadd.f32 %v705_v62, %v4174_v33  ;;  %v2112_v33 = vrot.slane %v2111_v9, 4  ;;  %v2128_v57 = vshll.u32 %v4324_v34, 16 }
  0xea   : > { %v1665_v62 = vunpack.c.l.b16 %v1612_v3  ;;  %v2237_v9 = vunpack.c.l.b16 %v2107_v52  ;;  %v3157_v3 = vld [vmem:[%s3640_s26 + $0x3c] sm:$0xe]  ;;  %v2438_v52 = vrot.slane %v4324_v34, 5 }
  0xeb   : > { %1756 = vmatmul.bf16.gmra.mxu1 %v1676_v38  ;;  %1951 = vmatmul.bf16.gmra.mxu2 %v3518_v25  ;;  %v1507_v0 = vpop.f32.mrf.mxu0  ;;  %v4321_v50 = vadd.f32 %v1504_v45, %v1162_v53  ;;  %v2119_v45 = vshrl.u32 %v3325_v8, 16  ;;  %v2132_v38 = vshrl.u32 %v4324_v34, 16  ;;  %v2117_v5 = vsel %vm3669_vm2, %v2112_v33, %v2116_v32  ;;  %v3519_v33 = vld [vmem:[%s3640_s26 + $0x3c] sm:$0xff] }
  0xec   : > { %v2124_v53 = vrot.slane %v2122_v59, 5  ;;  %v2238_v21 = vunpack.c.l.b16 %v2117_v5  ;;  %v2130_v26 = vrot.slane %v2128_v57, 5  ;;  %v1677_v31 = vpack.c.b16 %v1665_v62, %v1664_v60  ;;  %v3328_v57 = vld [vmem:[%s3640_s26 + $0x54] sm:$0xf]  ;;  %v3389_v60 = vld [vmem:[%s3640_s26 + $0x48] sm:$0xe] }
  0xed   : > { %2329 = vmatmul.bf16.gmra.mxu3 %v2249_v11  ;;  %v2435_v11 = vsel %vm3880_vm5, %v2433_v14, %v2434_v36  ;;  %v2121_v15 = vrot.slane %v2119_v45, 4  ;;  %v2134_v29 = vrot.slane %v2132_v38, 4  ;;  %v1615_v32 = vrot.slane %v4057_v39, 5  ;;  %v4355_v62 = vld [vmem:[%s3640_s26 + $0x58] sm:$0xf] }
  0xee   : > { %v934_v24 = vpop.f32.mrf.mxu2  ;;  %2579 = vmatmul.bf16.gmra.mxu0 %v2499_v23  ;;  %v2487_v23 = vunpack.c.l.b16 %v2432_v17  ;;  %v2488_v1 = vunpack.c.l.b16 %v2435_v11  ;;  %v2250_v40 = vpack.c.b16 %v2238_v21, %v2237_v9  ;;  %v2138_v14 = vshll.u32 %v3327_v42, 16 }
  0xef   : > { %v968_v28 = vadd.f32 %v934_v24, %v706_v22  ;;  %v2125_v24 = vor.u32 %v2124_v53, %v2121_v15  ;;  %v2135_v16 = vor.u32 %v2134_v29, %v2130_v26  ;;  %v3165_v45 = vrot.slane %v3157_v3, 9 }
  0xf0   : > { %v1129_v47 = vpop.f32.mrf.mxu3  ;;  %v707_v56 = vpop.f32.mrf.mxu1  ;;  %v2500_v36 = vpack.c.b16 %v2488_v1, %v2487_v23  ;;  %v1617_v59 = vrot.slane %v1615_v32, 4  ;;  %v2143_v17 = vshrl.u32 %v3328_v57, 16  ;;  %v2146_v11 = vshll.u32 %v3328_v57, 16 }
  0xf1   : > { %v1163_v25 = vadd.f32 %v1129_v47, %v968_v28  ;;  %v708_v49 = vadd.f32 %v707_v56, %v4198_v2  ;;  %v1618_v56 = vrot.slane %v4070_v18, 5  ;;  %v2126_v39 = vrot.slane %v2125_v24, 4 }
  0xf2   : > { %v1616_v18 = vsel %vm3880_vm5, %v3165_v45, %v1615_v32  ;;  %v3397_v29 = vrot.slane %v3389_v60, 9  ;;  %v2441_v23 = vrot.slane %v3327_v42, 5  ;;  %v2148_v32 = vrot.slane %v2146_v11, 5  ;;  %v3330_v45 = vld [vmem:[%s3640_s26 + $0x5c] sm:$0x1] }
  0xf3   : > { %v4341_v22 = vadd.f32 %v1507_v0, %v1163_v25  ;;  %v1509_v2 = vpop.f32.mrf.mxu0  ;;  %v2136_v25 = vrot.slane %v2135_v16, 4  ;;  %v1619_v9 = vsel %vm3880_vm5, %v1617_v59, %v1618_v56  ;;  %v2131_v34 = vsel %vm3669_vm2, %v2126_v39, %v2130_v26  ;;  %v3158_v60 = vld [vmem:[%s3640_s26 + $0x48] sm:$0xe] }
  0xf4   : > { %v1666_v24 = vunpack.c.l.b16 %v1616_v18  ;;  %v2239_v3 = vunpack.c.l.b16 %v2131_v34  ;;  %v2439_v42 = vsel %vm3880_vm5, %v3397_v29, %v2438_v52  ;;  %v2445_v29 = vrot.slane %v4355_v62, 5 }
  0xf6   : > { %v936_v51 = vpop.f32.mrf.mxu2 }
  0xf7   : > { %v969_v8 = vadd.f32 %v936_v51, %v708_v49  ;;  %v2140_v49 = vrot.slane %v2138_v14, 5  ;;  %v2440_v51 = vrot.slane %v2438_v52, 4 }
  0xf8   : > { %v1131_v6 = vpop.f32.mrf.mxu3  ;;  %v710_v0 = vpop.f32.mrf.mxu1 }
  0xf9   : > { %v1164_v28 = vadd.f32 %v1131_v6, %v969_v8  ;;  %v711_v47 = vadd.f32 %v710_v0, %v4214_v37  ;;  %v2141_v21 = vsel %vm3669_vm2, %v2136_v25, %v2140_v49  ;;  %v2152_v6 = vshll.u32 %v4355_v62, 16 }
  0xfa   : > { %v1667_v0 = vunpack.c.l.b16 %v1619_v9  ;;  %v2240_v16 = vunpack.c.l.b16 %v2141_v21  ;;  %v2489_v25 = vunpack.c.l.b16 %v2439_v42  ;;  %v3390_v21 = vld [vmem:[%s3640_s26 + $0x54] sm:$0xe]  ;;  %v2447_v42 = vrot.slane %v2445_v29, 4 }
  0xfb   : > { %1761 = vmatmul.bf16.gmra.mxu1 %v1677_v31  ;;  %1956 = vmatmul.bf16.gmra.mxu2 %v3519_v33  ;;  %v1512_v38 = vpop.f32.mrf.mxu0  ;;  %v4351_v5 = vadd.f32 %v1509_v2, %v1164_v28  ;;  %v2156_v31 = vshrl.u32 %v4355_v62, 16  ;;  %v2145_v33 = vrot.slane %v2143_v17, 4  ;;  %v2154_v14 = vrot.slane %v2152_v6, 5 }
  0xfc   : > { %v1678_v57 = vpack.c.b16 %v1667_v0, %v1666_v24  ;;  %v2251_v52 = vpack.c.b16 %v2240_v16, %v2239_v3 }
  0xfd   : > { %2334 = vmatmul.bf16.gmra.mxu3 %v2250_v40  ;;  %v2158_v28 = vrot.slane %v2156_v31, 4  ;;  %v2149_v59 = vor.u32 %v2148_v32, %v2145_v33  ;;  %v4386_v31 = vld [vmem:[%s3640_s26 + $0x64] sm:$0xf] }
  0xfe   : > { %v939_v37 = vpop.f32.mrf.mxu2  ;;  %2584 = vmatmul.bf16.gmra.mxu0 %v2500_v36  ;;  %v1622_v36 = vrot.slane %v4080_v20, 5  ;;  %v1625_v20 = vrot.slane %v4104_v63, 5 }
  0xff   : > { %v970_v15 = vadd.f32 %v939_v37, %v711_v47  ;;  %v2159_v11 = vor.u32 %v2158_v28, %v2154_v14  ;;  %v2150_v9 = vrot.slane %v2149_v59, 4  ;;  %v2176_v28 = vshll.u32 %v4386_v31, 16 }
 0x100   : > { %v1134_v53 = vpop.f32.mrf.mxu3  ;;  %v712_v2 = vpop.f32.mrf.mxu1  ;;  %v1624_v18 = vrot.slane %v1622_v36, 4 }
 0x101   : > { %v1165_v1 = vadd.f32 %v1134_v53, %v970_v15  ;;  %v713_v8 = vadd.f32 %v712_v2, %v4238_v44  ;;  %v2442_v44 = vsel %vm3880_vm5, %v2440_v51, %v2441_v23  ;;  %v2162_v15 = vshll.u32 %v3330_v45, 16  ;;  %v3331_v51 = vld [vmem:[%s3640_s26 + $0x60] sm:$0xf] }
 0x102   : > { %v2490_v49 = vunpack.c.l.b16 %v2442_v44  ;;  %v3166_v53 = vrot.slane %v3158_v60, 9  ;;  %v1626_v32 = vsel %vm3880_vm5, %v1624_v18, %v1625_v20  ;;  %v2155_v24 = vsel %vm3669_vm2, %v2150_v9, %v2154_v14 }
 0x103   : > { %v4368_v26 = vadd.f32 %v1512_v38, %v1165_v1  ;;  %v1514_v40 = vpop.f32.mrf.mxu0  ;;  %v3520_v38 = vld [vmem:[%s3640_s26 + $0x48] sm:$0xff]  ;;  %v2164_v6 = vrot.slane %v2162_v15, 5  ;;  %v2167_v3 = vshrl.u32 %v3331_v51, 16  ;;  %v2448_v44 = vrot.slane %v3330_v45, 5 }
 0x104   : > { %v2501_v34 = vpack.c.b16 %v2490_v49, %v2489_v25  ;;  %v1623_v63 = vsel %vm3880_vm5, %v3166_v53, %v1622_v36  ;;  %v1669_v14 = vunpack.c.l.b16 %v1626_v32  ;;  %v3333_v15 = vld [vmem:[%s3640_s26 + $0x68] sm:$0x1] }
 0x106   : > { %v941_v47 = vpop.f32.mrf.mxu2 }
 0x107   : > { %v971_v56 = vadd.f32 %v941_v47, %v713_v8  ;;  %v2160_v8 = vrot.slane %v2159_v11, 4  ;;  %v2180_v47 = vshrl.u32 %v4386_v31, 16 }
 0x108   : > { %v1136_v39 = vpop.f32.mrf.mxu3  ;;  %v715_v37 = vpop.f32.mrf.mxu1 }
 0x109   : > { %v1166_v17 = vadd.f32 %v1136_v39, %v971_v56  ;;  %v716_v1 = vadd.f32 %v715_v37, %v4188_v55  ;;  %v2170_v55 = vshll.u32 %v3331_v51, 16  ;;  %v2165_v59 = vsel %vm3669_vm2, %v2160_v8, %v2164_v6  ;;  %v3159_v51 = vld [vmem:[%s3640_s26 + $0x54] sm:$0xe] }
 0x10a   : > { %v1668_v56 = vunpack.c.l.b16 %v1623_v63  ;;  %v2241_v39 = vunpack.c.l.b16 %v2155_v24  ;;  %v2242_v60 = vunpack.c.l.b16 %v2165_v59  ;;  %v2449_v37 = vsel %vm3880_vm5, %v2447_v42, %v2448_v44 }
 0x10b   : > { %1766 = vmatmul.bf16.gmra.mxu1 %v1678_v57  ;;  %1961 = vmatmul.bf16.gmra.mxu2 %v3520_v38  ;;  %v1517_v2 = vpop.f32.mrf.mxu0  ;;  %v4382_v23 = vadd.f32 %v1514_v40, %v1166_v17  ;;  %v3398_v40 = vrot.slane %v3390_v21, 9  ;;  %v2169_v38 = vrot.slane %v2167_v3, 4  ;;  %v2172_v25 = vrot.slane %v2170_v55, 5  ;;  %v3521_v21 = vld [vmem:[%s3640_s26 + $0x54] sm:$0xff] }
 0x10c   : > { %v2182_v17 = vrot.slane %v2180_v47, 4  ;;  %v1679_v18 = vpack.c.b16 %v1669_v14, %v1668_v56  ;;  %v2252_v6 = vpack.c.b16 %v2242_v60, %v2241_v39  ;;  %v2186_v63 = vshll.u32 %v3333_v15, 16  ;;  %v3334_v47 = vld [vmem:[%s3640_s26 + $0x6c] sm:$0xf]  ;;  %v4419_v56 = vld [vmem:[%s3640_s26 + $0x70] sm:$0xf] }
 0x10d   : > { %2339 = vmatmul.bf16.gmra.mxu3 %v2251_v52  ;;  %v2446_v57 = vsel %vm3880_vm5, %v3398_v40, %v2445_v29  ;;  %v2178_v52 = vrot.slane %v2176_v28, 5  ;;  %v2492_v29 = vunpack.c.l.b16 %v2449_v37  ;;  %v2452_v42 = vrot.slane %v4386_v31, 5 }
 0x10e   : > { %v944_v33 = vpop.f32.mrf.mxu2  ;;  %2589 = vmatmul.bf16.gmra.mxu0 %v2501_v34  ;;  %v2491_v20 = vunpack.c.l.b16 %v2446_v57  ;;  %v2188_v55 = vrot.slane %v2186_v63, 5  ;;  %v2191_v60 = vshrl.u32 %v3334_v47, 16  ;;  %v3336_v63 = vld [vmem:[%s3640_s26 + $0x74] sm:$0x1] }
 0x10f   : > { %v972_v62 = vadd.f32 %v944_v33, %v716_v1  ;;  %v2173_v1 = vor.u32 %v2172_v25, %v2169_v38  ;;  %v2183_v33 = vor.u32 %v2182_v17, %v2178_v52  ;;  %v2454_v25 = vrot.slane %v2452_v42, 4 }
 0x110   : > { %v1139_v0 = vpop.f32.mrf.mxu3  ;;  %v717_v16 = vpop.f32.mrf.mxu1  ;;  %v2502_v24 = vpack.c.b16 %v2492_v29, %v2491_v20  ;;  %v2194_v17 = vshll.u32 %v3334_v47, 16 }
 0x111   : > { %v1167_v36 = vadd.f32 %v1139_v0, %v972_v62  ;;  %v718_v11 = vadd.f32 %v717_v16, %v4207_v13  ;;  %v3167_v13 = vrot.slane %v3159_v51, 9  ;;  %v1632_v0 = vrot.slane %v4140_v48, 5  ;;  %v3391_v16 = vld [vmem:[%s3640_s26 + $0x60] sm:$0xe] }
 0x112   : > { %v2174_v40 = vrot.slane %v2173_v1, 4  ;;  %v3399_v57 = vrot.slane %v3391_v16, 9  ;;  %v2193_v51 = vrot.slane %v2191_v60, 4  ;;  %v2196_v1 = vrot.slane %v2194_v17, 5 }
 0x113   : > { %v4400_v45 = vadd.f32 %v1517_v2, %v1167_v36  ;;  %v1519_v49 = vpop.f32.mrf.mxu0  ;;  %v1629_v2 = vrot.slane %v4125_v46, 5  ;;  %v2184_v46 = vrot.slane %v2183_v33, 4  ;;  %v1636_v16 = vrot.slane %v4160_v12, 5 }
 0x114   : > { %v2179_v31 = vsel %vm3669_vm2, %v2174_v40, %v2178_v52  ;;  %v2453_v29 = vsel %vm3880_vm5, %v3399_v57, %v2452_v42  ;;  %v2459_v57 = vrot.slane %v4419_v56, 5 }
 0x115   : > { %v1631_v62 = vrot.slane %v1629_v2, 4  ;;  %v1630_v59 = vsel %vm3880_vm5, %v3167_v13, %v1629_v2 }
 0x116   : > { %v946_v53 = vpop.f32.mrf.mxu2 }
 0x117   : > { %v973_v9 = vadd.f32 %v946_v53, %v718_v11  ;;  %v1633_v39 = vsel %vm3880_vm5, %v1631_v62, %v1632_v0  ;;  %v2200_v11 = vshll.u32 %v4419_v56, 16  ;;  %v2204_v53 = vshrl.u32 %v4419_v56, 16  ;;  %v3522_v62 = vld [vmem:[%s3640_s26 + $0x60] sm:$0xff] }
 0x118   : > { %v1141_v34 = vpop.f32.mrf.mxu3  ;;  %v720_v8 = vpop.f32.mrf.mxu1  ;;  %v1671_v20 = vunpack.c.l.b16 %v1633_v39  ;;  %v2493_v0 = vunpack.c.l.b16 %v2453_v29  ;;  %v1638_v39 = vrot.slane %v1636_v16, 4  ;;  %v2462_v56 = vrot.slane %v3336_v63, 5 }
 0x119   : > { %v1168_v32 = vadd.f32 %v1141_v34, %v973_v9  ;;  %v721_v28 = vadd.f32 %v720_v8, %v4226_v27  ;;  %v2189_v27 = vsel %vm3669_vm2, %v2184_v46, %v2188_v55  ;;  %v2243_v9 = vunpack.c.l.b16 %v2179_v31  ;;  %v3160_v55 = vld [vmem:[%s3640_s26 + $0x60] sm:$0xe] }
 0x11a   : > { %v2202_v8 = vrot.slane %v2200_v11, 5  ;;  %v1639_v31 = vrot.slane %v4178_v41, 5 }
 0x11b   : > { %1771 = vmatmul.bf16.gmra.mxu1 %v1679_v18  ;;  %1966 = vmatmul.bf16.gmra.mxu2 %v3521_v21  ;;  %v1522_v3 = vpop.f32.mrf.mxu0  ;;  %v4412_v44 = vadd.f32 %v1519_v49, %v1168_v32  ;;  %v2455_v49 = vrot.slane %v3333_v15, 5  ;;  %v1670_v18 = vunpack.c.l.b16 %v1630_v59  ;;  %v2244_v21 = vunpack.c.l.b16 %v2189_v27 }
 0x11c   : > { %v3168_v59 = vrot.slane %v3160_v55, 9 }
 0x11d   : > { %2344 = vmatmul.bf16.gmra.mxu3 %v2252_v6  ;;  %v2456_v15 = vsel %vm3880_vm5, %v2454_v25, %v2455_v49  ;;  %v2206_v6 = vrot.slane %v2204_v53, 4  ;;  %v2253_v46 = vpack.c.b16 %v2244_v21, %v2243_v9  ;;  %v3392_v49 = vld [vmem:[%s3640_s26 + $0x6c] sm:$0xe] }
 0x11e   : > { %v949_v36 = vpop.f32.mrf.mxu2  ;;  %2594 = vmatmul.bf16.gmra.mxu0 %v2502_v24  ;;  %v1680_v24 = vpack.c.b16 %v1671_v20, %v1670_v18  ;;  %v2494_v40 = vunpack.c.l.b16 %v2456_v15  ;;  %v1637_v11 = vsel %vm3880_vm5, %v3168_v59, %v1636_v16  ;;  %v1640_v18 = vsel %vm3880_vm5, %v1638_v39, %v1639_v31 }
 0x11f   : > { %v974_v48 = vadd.f32 %v949_v36, %v721_v28  ;;  %v2197_v28 = vor.u32 %v2196_v1, %v2193_v51  ;;  %v2207_v47 = vor.u32 %v2206_v6, %v2202_v8  ;;  %v3400_v41 = vrot.slane %v3392_v49, 9 }
 0x120   : > { %v1144_v14 = vpop.f32.mrf.mxu3  ;;  %v722_v38 = vpop.f32.mrf.mxu1  ;;  %v2503_v36 = vpack.c.b16 %v2494_v40, %v2493_v0  ;;  %v2461_v20 = vrot.slane %v2459_v57, 4  ;;  %v1672_v21 = vunpack.c.l.b16 %v1637_v11  ;;  %v1673_v29 = vunpack.c.l.b16 %v1640_v18 }
 0x121   : > { %v1169_v37 = vadd.f32 %v1144_v14, %v974_v48  ;;  %v723_v2 = vadd.f32 %v722_v38, %v4250_v43  ;;  %v2210_v43 = vshll.u32 %v3336_v63, 16  ;;  %v2198_v38 = vrot.slane %v2197_v28, 4 }
 0x122   : > { %v2208_v27 = vrot.slane %v2207_v47, 4  ;;  %v2460_v6 = vsel %vm3880_vm5, %v3400_v41, %v2459_v57  ;;  %v1681_v30 = vpack.c.b16 %v1673_v29, %v1672_v21 }
 0x123   : > { %v4429_v52 = vadd.f32 %v1522_v3, %v1169_v37  ;;  %v1524_v34 = vpop.f32.mrf.mxu0  ;;  %v2212_v25 = vrot.slane %v2210_v43, 5 }
 0x126   : > { %v951_v33 = vpop.f32.mrf.mxu2 }
 0x127   : > { %v975_v32 = vadd.f32 %v951_v33, %v723_v2  ;;  %v2463_v33 = vsel %vm3880_vm5, %v2461_v20, %v2462_v56 }
 0x128   : > { %v1146_v13 = vpop.f32.mrf.mxu3  ;;  %v725_v3 = vpop.f32.mrf.mxu1  ;;  %v2496_v0 = vunpack.c.l.b16 %v2463_v33 }
 0x129   : > { %v1170_v42 = vadd.f32 %v1146_v13, %v975_v32  ;;  %v726_v12 = vadd.f32 %v725_v3, %v4190_v58  ;;  %v2203_v58 = vsel %vm3669_vm2, %v2198_v38, %v2202_v8 }
 0x12a   : > { %v2245_v2 = vunpack.c.l.b16 %v2203_v58 }
 0x12b   : > { %1776 = vmatmul.bf16.gmra.mxu1 %v1680_v24  ;;  %1971 = vmatmul.bf16.gmra.mxu2 %v3522_v62  ;;  %v4440_v48 = vadd.f32 %v1524_v34, %v1170_v42  ;;  %v1527_v14 = vpop.f32.mrf.mxu0  ;;  %v2213_v34 = vsel %vm3669_vm2, %v2208_v27, %v2212_v25  ;;  %v3523_v24 = vld [vmem:[%s3640_s26 + $0x6c] sm:$0xff]  ;;  %v2495_v62 = vunpack.c.l.b16 %v2460_v6  ;;  %s3451_s26 = sshll.u32 %s4546_s16, 7 }
 0x12c   : > { %v2246_v1 = vunpack.c.l.b16 %v2213_v34  ;;  %s4480_s5 = scalar_lea.vmem %s4539_s3, %s3451_s26 }
 0x12d   : > { %2349 = vmatmul.bf16.gmra.mxu3 %v2253_v46  ;;  %v2504_v55 = vpack.c.b16 %v2496_v0, %v2495_v62 }
 0x12e   : > { %v954_v60 = vpop.f32.mrf.mxu2  ;;  %2599 = vmatmul.bf16.gmra.mxu0 %v2503_v36  ;;  %v2254_v3 = vpack.c.b16 %v2246_v1, %v2245_v2 }
 0x12f   : > { %v976_v37 = vadd.f32 %v954_v60, %v726_v12 }
 0x130   : > { %v1149_v17 = vpop.f32.mrf.mxu3  ;;  %v727_v53 = vpop.f32.mrf.mxu1 }
 0x131   : > { %v1171_v9 = vadd.f32 %v1149_v17, %v976_v37  ;;  %v728_v63 = vadd.f32 %v727_v53, %v4210_v10 }
 0x133   : > { %v4454_v15 = vadd.f32 %v1527_v14, %v1171_v9  ;;  %v1529_v51 = vpop.f32.mrf.mxu0 }
 0x136   : > { %v956_v32 = vpop.f32.mrf.mxu2 }
 0x137   : > { %v977_v8 = vadd.f32 %v956_v32, %v728_v63 }
 0x138   : > { %v1151_v13 = vpop.f32.mrf.mxu3  ;;  %v730_v40 = vpop.f32.mrf.mxu1 }
 0x139   : > { %v1172_v46 = vadd.f32 %v1151_v13, %v977_v8  ;;  %v731_v61 = vadd.f32 %v730_v40, %v4234_v54 }
 0x13b   : > { %1781 = vmatmul.bf16.gmra.mxu1 %v1681_v30  ;;  %1976 = vmatmul.bf16.gmra.mxu2 %v3523_v24  ;;  %v4462_v16 = vadd.f32 %v1529_v51, %v1172_v46  ;;  %v1532_v42 = vpop.f32.mrf.mxu0 }
 0x13d   : > { %2354 = vmatmul.bf16.gmra.mxu3 %v2254_v3 }
 0x13e   : > { %v959_v10 = vpop.f32.mrf.mxu2  ;;  %2604 = vmatmul.bf16.gmra.mxu0 %v2504_v55 }
 0x13f   : > { %v978_v28 = vadd.f32 %v959_v10, %v731_v61 }
 0x140   : > { %v1154_v47 = vpop.f32.mrf.mxu3  ;;  %v732_v43 = vpop.f32.mrf.mxu1 }
 0x141   : > { %v1173_v36 = vadd.f32 %v1154_v47, %v978_v28  ;;  %v733_v39 = vadd.f32 %v732_v43, %v4253_v4  ;;  %v4475_v4 = vld [vmem:[%s4538_s2] ss:$0 sm:$0xff] }
 0x143   : > { %v4465_v59 = vadd.f32 %v1532_v42, %v1173_v36  ;;  %v1534_v14 = vpop.f32.mrf.mxu0 }
 0x146   : > { %v961_v31 = vpop.f32.mrf.mxu2 }
 0x147   : > { %v979_v57 = vadd.f32 %v961_v31, %v733_v39 }
 0x148   : > { %v1156_v12 = vpop.f32.mrf.mxu3  ;;  %v1747_v38 = vpop.f32.mrf.mxu1 }
 0x149   : > { %v1174_v27 = vadd.f32 %v1156_v12, %v979_v57  ;;  %v1787_v49 = vadd.f32 %v1747_v38, %v4279_v7 }
 0x14b   : > { %v4468_v25 = vadd.f32 %v1534_v14, %v1174_v27  ;;  %v2570_v54 = vpop.f32.mrf.mxu0 }
 0x14e   : > { %v1942_v60 = vpop.f32.mrf.mxu2 }
 0x14f   : > { %v1982_v37 = vadd.f32 %v1942_v60, %v1787_v49 }
 0x150   : > { %v2320_v17 = vpop.f32.mrf.mxu3  ;;  %v1749_v11 = vpop.f32.mrf.mxu1 }
 0x151   : > { %v2360_v53 = vadd.f32 %v2320_v17, %v1982_v37  ;;  %v1788_v20 = vadd.f32 %v1749_v11, %v4289_v19 }
 0x153   : > { %v2610_v18 = vadd.f32 %v2570_v54, %v2360_v53  ;;  %v2572_v7 = vpop.f32.mrf.mxu0 }
 0x155   : > { %v2630_v41 = vadd.f32 %v4475_v4, %v2610_v18 }
 0x156   : > { %v1944_v56 = vpop.f32.mrf.mxu2 }
 0x157   : > { %2646 = vst [vmem:[%s4480_s5] sm:$0xff] %v2630_v41  ;;  %v1983_v9 = vadd.f32 %v1944_v56, %v1788_v20  ;;  %v2684_v33 = vmul.f32 %v2630_v41, %v2630_v41 }
 0x158   : > { %v2322_v58 = vpop.f32.mrf.mxu3  ;;  %v1752_v34 = vpop.f32.mrf.mxu1 }
 0x159   : > { %v2361_v21 = vadd.f32 %v2322_v58, %v1983_v9  ;;  %v1789_v1 = vadd.f32 %v1752_v34, %v4306_v35 }
 0x15b   : > { %v2611_v29 = vadd.f32 %v2572_v7, %v2361_v21  ;;  %v2575_v51 = vpop.f32.mrf.mxu0 }
 0x15d   : > { %v2631_v2 = vadd.f32 %v4475_v4, %v2611_v29 }
 0x15e   : > { %v1947_v6 = vpop.f32.mrf.mxu2 }
 0x15f   : > { %2647 = vst [vmem:[%s4480_s5 + $0x8] sm:$0xff] %v2631_v2  ;;  %v2662_v63 = vadd.f32 %v2631_v2, %v2630_v41  ;;  %v2685_v32 = vmul.f32 %v2631_v2, %v2631_v2  ;;  %v1984_v8 = vadd.f32 %v1947_v6, %v1789_v1 }
 0x160   : > { %v2325_v19 = vpop.f32.mrf.mxu3  ;;  %v1754_v13 = vpop.f32.mrf.mxu1 }
 0x161   : > { %v2700_v30 = vadd.f32 %v2685_v32, %v2684_v33  ;;  %v2362_v24 = vadd.f32 %v2325_v19, %v1984_v8  ;;  %v1790_v3 = vadd.f32 %v1754_v13, %v4321_v50 }
 0x163   : > { %v2612_v62 = vadd.f32 %v2575_v51, %v2362_v24  ;;  %v2577_v0 = vpop.f32.mrf.mxu0 }
 0x165   : > { %v2632_v40 = vadd.f32 %v4475_v4, %v2612_v62 }
 0x166   : > { %v1949_v46 = vpop.f32.mrf.mxu2 }
 0x167   : > { %2648 = vst [vmem:[%s4480_s5 + $0x10] sm:$0xff] %v2632_v40  ;;  %v2663_v35 = vadd.f32 %v2662_v63, %v2632_v40  ;;  %v2686_v55 = vmul.f32 %v2632_v40, %v2632_v40  ;;  %v1985_v42 = vadd.f32 %v1949_v46, %v1790_v3 }
 0x168   : > { %v2327_v61 = vpop.f32.mrf.mxu3  ;;  %v1757_v10 = vpop.f32.mrf.mxu1 }
 0x169   : > { %v2701_v28 = vadd.f32 %v2700_v30, %v2686_v55  ;;  %v2363_v47 = vadd.f32 %v2327_v61, %v1985_v42  ;;  %v1791_v39 = vadd.f32 %v1757_v10, %v4341_v22 }
 0x16b   : > { %v2613_v43 = vadd.f32 %v2577_v0, %v2363_v47  ;;  %v2580_v36 = vpop.f32.mrf.mxu0 }
 0x16d   : > { %v2633_v14 = vadd.f32 %v4475_v4, %v2613_v43 }
 0x16e   : > { %v1952_v31 = vpop.f32.mrf.mxu2 }
 0x16f   : > { %2649 = vst [vmem:[%s4480_s5 + $0x18] sm:$0xff] %v2633_v14  ;;  %v2664_v57 = vadd.f32 %v2663_v35, %v2633_v14  ;;  %v2687_v50 = vmul.f32 %v2633_v14, %v2633_v14  ;;  %v1986_v12 = vadd.f32 %v1952_v31, %v1791_v39 }
 0x170   : > { %v2330_v38 = vpop.f32.mrf.mxu3  ;;  %v1759_v27 = vpop.f32.mrf.mxu1 }
 0x171   : > { %v2702_v54 = vadd.f32 %v2701_v28, %v2687_v50  ;;  %v2364_v49 = vadd.f32 %v2330_v38, %v1986_v12  ;;  %v1792_v11 = vadd.f32 %v1759_v27, %v4351_v5 }
 0x173   : > { %v2614_v60 = vadd.f32 %v2580_v36, %v2364_v49  ;;  %v2582_v37 = vpop.f32.mrf.mxu0 }
 0x175   : > { %v2634_v17 = vadd.f32 %v4475_v4, %v2614_v60 }
 0x176   : > { %v1954_v53 = vpop.f32.mrf.mxu2 }
 0x177   : > { %2650 = vst [vmem:[%s4480_s5 + $0x20] sm:$0xff] %v2634_v17  ;;  %v2665_v18 = vadd.f32 %v2664_v57, %v2634_v17  ;;  %v2688_v22 = vmul.f32 %v2634_v17, %v2634_v17  ;;  %v1987_v7 = vadd.f32 %v1954_v53, %v1792_v11 }
 0x178   : > { %v2332_v41 = vpop.f32.mrf.mxu3  ;;  %v1762_v20 = vpop.f32.mrf.mxu1 }
 0x179   : > { %v2703_v56 = vadd.f32 %v2702_v54, %v2688_v22  ;;  %v2365_v9 = vadd.f32 %v2332_v41, %v1987_v7  ;;  %v1793_v29 = vadd.f32 %v1762_v20, %v4368_v26 }
 0x17b   : > { %v2615_v58 = vadd.f32 %v2582_v37, %v2365_v9  ;;  %v2585_v34 = vpop.f32.mrf.mxu0 }
 0x17d   : > { %v2635_v21 = vadd.f32 %v4475_v4, %v2615_v58 }
 0x17e   : > { %v1957_v51 = vpop.f32.mrf.mxu2 }
 0x17f   : > { %2651 = vst [vmem:[%s4480_s5 + $0x28] sm:$0xff] %v2635_v21  ;;  %v2666_v2 = vadd.f32 %v2665_v18, %v2635_v21  ;;  %v2689_v5 = vmul.f32 %v2635_v21, %v2635_v21  ;;  %v1988_v1 = vadd.f32 %v1957_v51, %v1793_v29 }
 0x180   : > { %v2335_v6 = vpop.f32.mrf.mxu3  ;;  %v1764_v33 = vpop.f32.mrf.mxu1 }
 0x181   : > { %v2704_v63 = vadd.f32 %v2703_v56, %v2689_v5  ;;  %v2366_v32 = vadd.f32 %v2335_v6, %v1988_v1  ;;  %v1794_v30 = vadd.f32 %v1764_v33, %v4382_v23 }
 0x183   : > { %v2616_v8 = vadd.f32 %v2585_v34, %v2366_v32  ;;  %v2587_v19 = vpop.f32.mrf.mxu0 }
 0x185   : > { %v2636_v13 = vadd.f32 %v4475_v4, %v2616_v8 }
 0x186   : > { %v1959_v24 = vpop.f32.mrf.mxu2 }
 0x187   : > { %2652 = vst [vmem:[%s4480_s5 + $0x30] sm:$0xff] %v2636_v13  ;;  %v2667_v62 = vadd.f32 %v2666_v2, %v2636_v13  ;;  %v2690_v26 = vmul.f32 %v2636_v13, %v2636_v13  ;;  %v1989_v0 = vadd.f32 %v1959_v24, %v1794_v30 }
 0x188   : > { %v2337_v40 = vpop.f32.mrf.mxu3  ;;  %v1767_v3 = vpop.f32.mrf.mxu1 }
 0x189   : > { %v2705_v46 = vadd.f32 %v2704_v63, %v2690_v26  ;;  %v2367_v35 = vadd.f32 %v2337_v40, %v1989_v0  ;;  %v1795_v10 = vadd.f32 %v1767_v3, %v4400_v45 }
 0x18b   : > { %v2617_v55 = vadd.f32 %v2587_v19, %v2367_v35  ;;  %v2590_v42 = vpop.f32.mrf.mxu0 }
 0x18d   : > { %v2637_v61 = vadd.f32 %v4475_v4, %v2617_v55 }
 0x18e   : > { %v1962_v28 = vpop.f32.mrf.mxu2 }
 0x18f   : > { %2653 = vst [vmem:[%s4480_s5 + $0x38] sm:$0xff] %v2637_v61  ;;  %v2668_v47 = vadd.f32 %v2667_v62, %v2637_v61  ;;  %v2691_v23 = vmul.f32 %v2637_v61, %v2637_v61  ;;  %v1990_v43 = vadd.f32 %v1962_v28, %v1795_v10 }
 0x190   : > { %v2340_v36 = vpop.f32.mrf.mxu3  ;;  %v1769_v14 = vpop.f32.mrf.mxu1 }
 0x191   : > { %v2706_v39 = vadd.f32 %v2705_v46, %v2691_v23  ;;  %v2368_v31 = vadd.f32 %v2340_v36, %v1990_v43  ;;  %v1796_v38 = vadd.f32 %v1769_v14, %v4412_v44 }
 0x193   : > { %v2618_v57 = vadd.f32 %v2590_v42, %v2368_v31  ;;  %v2592_v50 = vpop.f32.mrf.mxu0 }
 0x195   : > { %v2638_v12 = vadd.f32 %v4475_v4, %v2618_v57 }
 0x196   : > { %v1964_v27 = vpop.f32.mrf.mxu2 }
 0x197   : > { %2654 = vst [vmem:[%s4480_s5 + $0x40] sm:$0xff] %v2638_v12  ;;  %v2669_v54 = vadd.f32 %v2668_v47, %v2638_v12  ;;  %v2692_v45 = vmul.f32 %v2638_v12, %v2638_v12  ;;  %v1991_v49 = vadd.f32 %v1964_v27, %v1796_v38 }
 0x198   : > { %v2342_v60 = vpop.f32.mrf.mxu3  ;;  %v1772_v37 = vpop.f32.mrf.mxu1 }
 0x199   : > { %v2707_v17 = vadd.f32 %v2706_v39, %v2692_v45  ;;  %v2369_v11 = vadd.f32 %v2342_v60, %v1991_v49  ;;  %v1797_v7 = vadd.f32 %v1772_v37, %v4429_v52 }
 0x19b   : > { %v2619_v53 = vadd.f32 %v2592_v50, %v2369_v11  ;;  %v2595_v18 = vpop.f32.mrf.mxu0 }
 0x19d   : > { %v2639_v22 = vadd.f32 %v4475_v4, %v2619_v53 }
 0x19e   : > { %v1967_v41 = vpop.f32.mrf.mxu2 }
 0x19f   : > { %2655 = vst [vmem:[%s4480_s5 + $0x48] sm:$0xff] %v2639_v22  ;;  %v2670_v20 = vadd.f32 %v2669_v54, %v2639_v22  ;;  %v2693_v44 = vmul.f32 %v2639_v22, %v2639_v22  ;;  %v1992_v56 = vadd.f32 %v1967_v41, %v1797_v7 }
 0x1a0   : > { %v2345_v9 = vpop.f32.mrf.mxu3  ;;  %v1774_v58 = vpop.f32.mrf.mxu1 }
 0x1a1   : > { %v2708_v34 = vadd.f32 %v2707_v17, %v2693_v44  ;;  %v2370_v21 = vadd.f32 %v2345_v9, %v1992_v56  ;;  %v1798_v5 = vadd.f32 %v1774_v58, %v4440_v48 }
 0x1a3   : > { %v2620_v29 = vadd.f32 %v2595_v18, %v2370_v21  ;;  %v2597_v51 = vpop.f32.mrf.mxu0 }
 0x1a5   : > { %v2640_v2 = vadd.f32 %v4475_v4, %v2620_v29 }
 0x1a6   : > { %v1969_v1 = vpop.f32.mrf.mxu2 }
 0x1a7   : > { %2656 = vst [vmem:[%s4480_s5 + $0x50] sm:$0xff] %v2640_v2  ;;  %v2671_v6 = vadd.f32 %v2670_v20, %v2640_v2  ;;  %v2694_v52 = vmul.f32 %v2640_v2, %v2640_v2  ;;  %v1993_v33 = vadd.f32 %v1969_v1, %v1798_v5 }
 0x1a8   : > { %v2347_v63 = vpop.f32.mrf.mxu3  ;;  %v1777_v32 = vpop.f32.mrf.mxu1 }
 0x1a9   : > { %v2709_v8 = vadd.f32 %v2708_v34, %v2694_v52  ;;  %v2371_v19 = vadd.f32 %v2347_v63, %v1993_v33  ;;  %v1799_v62 = vadd.f32 %v1777_v32, %v4454_v15 }
 0x1ab   : > { %v2621_v13 = vadd.f32 %v2597_v51, %v2371_v19  ;;  %v2600_v30 = vpop.f32.mrf.mxu0 }
 0x1ad   : > { %v2641_v24 = vadd.f32 %v4475_v4, %v2621_v13 }
 0x1ae   : > { %v1972_v26 = vpop.f32.mrf.mxu2 }
 0x1af   : > { %2657 = vst [vmem:[%s4480_s5 + $0x58] sm:$0xff] %v2641_v24  ;;  %v2672_v0 = vadd.f32 %v2671_v6, %v2641_v24  ;;  %v2695_v48 = vmul.f32 %v2641_v24, %v2641_v24  ;;  %v1994_v40 = vadd.f32 %v1972_v26, %v1799_v62 }
 0x1b0   : > { %v2350_v3 = vpop.f32.mrf.mxu3  ;;  %v1779_v46 = vpop.f32.mrf.mxu1 }
 0x1b1   : > { %v2710_v35 = vadd.f32 %v2709_v8, %v2695_v48  ;;  %v2372_v55 = vadd.f32 %v2350_v3, %v1994_v40  ;;  %v1800_v10 = vadd.f32 %v1779_v46, %v4462_v16 }
 0x1b3   : > { %v2622_v42 = vadd.f32 %v2600_v30, %v2372_v55  ;;  %v2602_v28 = vpop.f32.mrf.mxu0 }
 0x1b5   : > { %v2642_v61 = vadd.f32 %v4475_v4, %v2622_v42 }
 0x1b6   : > { %v1974_v47 = vpop.f32.mrf.mxu2 }
 0x1b7   : > { %2658 = vst [vmem:[%s4480_s5 + $0x60] sm:$0xff] %v2642_v61  ;;  %v2673_v23 = vadd.f32 %v2672_v0, %v2642_v61  ;;  %v2696_v15 = vmul.f32 %v2642_v61, %v2642_v61  ;;  %v1995_v43 = vadd.f32 %v1974_v47, %v1800_v10 }
 0x1b8   : > { %v2352_v36 = vpop.f32.mrf.mxu3  ;;  %v1782_v14 = vpop.f32.mrf.mxu1 }
 0x1b9   : > { %v2711_v39 = vadd.f32 %v2710_v35, %v2696_v15  ;;  %v2373_v31 = vadd.f32 %v2352_v36, %v1995_v43  ;;  %v1801_v12 = vadd.f32 %v1782_v14, %v4465_v59 }
 0x1bb   : > { %v2623_v57 = vadd.f32 %v2602_v28, %v2373_v31  ;;  %v2605_v49 = vpop.f32.mrf.mxu0 }
 0x1bd   : > { %v2643_v50 = vadd.f32 %v4475_v4, %v2623_v57 }
 0x1be   : > { %v1977_v38 = vpop.f32.mrf.mxu2 }
 0x1bf   : > { %2659 = vst [vmem:[%s4480_s5 + $0x68] sm:$0xff] %v2643_v50  ;;  %v2674_v27 = vadd.f32 %v2673_v23, %v2643_v50  ;;  %v2697_v16 = vmul.f32 %v2643_v50, %v2643_v50  ;;  %v1996_v54 = vadd.f32 %v1977_v38, %v1801_v12 }
 0x1c0   : > { %v2355_v45 = vpop.f32.mrf.mxu3  ;;  %v1784_v17 = vpop.f32.mrf.mxu1 }
 0x1c1   : > { %v2712_v60 = vadd.f32 %v2711_v39, %v2697_v16  ;;  %v2374_v37 = vadd.f32 %v2355_v45, %v1996_v54  ;;  %v1802_v18 = vadd.f32 %v1784_v17, %v4468_v25 }
 0x1c3   : > { %v2624_v11 = vadd.f32 %v2605_v49, %v2374_v37  ;;  %v2607_v9 = vpop.f32.mrf.mxu0 }
 0x1c5   : > { %v2644_v53 = vadd.f32 %v4475_v4, %v2624_v11 }
 0x1c6   : > { %v1979_v22 = vpop.f32.mrf.mxu2 }
 0x1c7   : > { %2660 = vst [vmem:[%s4480_s5 + $0x70] sm:$0xff] %v2644_v53  ;;  %v2675_v7 = vadd.f32 %v2674_v27, %v2644_v53  ;;  %v2698_v59 = vmul.f32 %v2644_v53, %v2644_v53  ;;  %v1997_v41 = vadd.f32 %v1979_v22, %v1802_v18 }
 0x1c8   : > { %v2357_v20 = vpop.f32.mrf.mxu3 }
 0x1c9   : > { %v2713_v44 = vadd.f32 %v2712_v60, %v2698_v59  ;;  %v2375_v56 = vadd.f32 %v2357_v20, %v1997_v41 }
 0x1cb   : > { %v2625_v58 = vadd.f32 %v2607_v9, %v2375_v56 }
 0x1cd   : > { %v2645_v34 = vadd.f32 %v4475_v4, %v2625_v58 }
 0x1cf   : > { %2661 = vst [vmem:[%s4480_s5 + $0x78] sm:$0xff] %v2645_v34  ;;  %v2676_v21 = vadd.f32 %v2675_v7, %v2645_v34  ;;  %v2699_v29 = vmul.f32 %v2645_v34, %v2645_v34 }
 0x1d1   : > { %v2677_v51 = vrot.slane %v2676_v21, 4  ;;  %v2714_v2 = vadd.f32 %v2713_v44, %v2699_v29 }
 0x1d3   : > { %v2678_v5 = vadd.f32 %v2677_v51, %v2676_v21  ;;  %v2715_v25 = vrot.slane %v2714_v2, 4 }
 0x1d5   : > { %v2679_v1 = vrot.slane %v2678_v5, 2  ;;  %v2716_v6 = vadd.f32 %v2715_v25, %v2714_v2 }
 0x1d7   : > { %v2680_v52 = vadd.f32 %v2679_v1, %v2678_v5  ;;  %v2717_v33 = vrot.slane %v2716_v6, 2 }
 0x1d9   : > { %v2681_v63 = vrot.slane %v2680_v52, 1  ;;  %v2718_v32 = vadd.f32 %v2717_v33, %v2716_v6 }
 0x1db   : > { %v2682_v8 = vadd.f32 %v2681_v63, %v2680_v52  ;;  %v2719_v4 = vrot.slane %v2718_v32, 1 }
 0x1dd   : > { %2683 = vst [vmem:[%s208_s9] sm:$0x1] %v2682_v8  ;;  %v2720_v19 = vadd.f32 %v2719_v4, %v2718_v32 }
 0x1df   : > { %2721 = vst [vmem:[%s208_s9 + $0x1] sm:$0x1] %v2720_v19 }
 0x1e0 PF: > { %s15_s15 = sadd.s32 1, %s3590_s15  }
 0x1e1   : > { %p12_p4 = scmp.ge.s32.totalorder %s15_s15, 6  }
 0x1e3   :  { %14 = sbr.rel (!%p12_p4) target bundleno = 1 (0x1), region = 84 }

</bundles_post_ra>
